<compile_context>
chip_gen: v7x
topology: tpu7x:2x2x1
jax: 0.10.0
libtpu: 0.0.40
codegen_flags: <defaults>
</compile_context>

<pallas_src>
import math
import jax
import jax.numpy as jnp
from jax.experimental import pallas as pl
from jax.experimental.pallas import tpu as pltpu


# ------------------------------- Fused forward kernel -----------------------------------

def _temporal_lstm_kernel(Hf_ref, y0_ref, Wa_ref, ba_ref, Va_ref, W_ref, bias_ref,
                          Wy_ref, Ueff_ref, gb_ref, fcwT_ref, fcb_ref,
                          y_out_ref, hseq_ref, betas_ref,
                          gx_ref):
    BS, _ = Hf_ref.shape                    # (B*S, D)
    S = Va_ref.shape[0]
    B = BS // S
    HS = Ueff_ref.shape[0]

    # ----------------- attention / input projection (non-recurrent) -----------------
    # Whole batch at once on flattened (B*S, ...) operands: fills MXU sublanes and
    # avoids per-batch grid steps.
    Hflat = Hf_ref[...]                                                       # (B*S, D)
    pre = jnp.tanh(
        jnp.dot(Hflat, Wa_ref[...], preferred_element_type=jnp.float32) + ba_ref[...]
    )                                                                         # (B*S, S)
    logits = jnp.dot(pre, Va_ref[...], preferred_element_type=jnp.float32)    # (B*S, S)

    # softmax over the last axis (exact division, stays within 1e-4 of the f32 ref)
    m = jnp.max(logits, axis=-1, keepdims=True)
    e = jnp.exp(logits - m)
    beta_flat = e / jnp.sum(e, axis=-1, keepdims=True)                        # (B*S, S)
    betas_ref[...] = beta_flat                                                # single store

    # Attention-weighted sum over time as a per-batch matmul (static, tile-aligned
    # slices: S = 8 rows per batch), then one flattened projection matmul.
    h_att_rows = []
    for b in range(B):
        Hb = Hflat[b * S:(b + 1) * S, :]                                      # (S, D)
        bb = beta_flat[b * S:(b + 1) * S, :]                                  # (S, S)
        h_att_rows.append(jnp.dot(bb, Hb, preferred_element_type=jnp.float32))
    h_att_flat = jnp.concatenate(h_att_rows, axis=0)                          # (B*S, D)

    gx_flat = (
        jnp.dot(h_att_flat, W_ref[...], preferred_element_type=jnp.float32) + bias_ref[...]
    )                                                                         # (B*S, 4*HS)

    # Stage gates_x batch-major in VMEM scratch so the recurrence can read (B, 4*HS)
    # per timestep.  No HBM round trip.
    for b in range(B):
        gx_ref[b] = gx_flat[b * S:(b + 1) * S, :]

    # ------------------------- LSTM recurrence (serial over t) ----------------------
    Ueff = Ueff_ref[...]                         # U + fc_w.T @ Wy   (loop-invariant)
    gb = gb_ref[...]                             # fc_b @ Wy
    y0Wy = jnp.dot(y0_ref[...], Wy_ref[...], preferred_element_type=jnp.float32)

    h = jnp.zeros((B, HS), jnp.float32)
    c = jnp.zeros((B, HS), jnp.float32)
    h_steps = []
    for t in range(S):                           # statically unrolled (S is small)
        gx_t = gx_ref[:, pl.ds(t, 1), :][:, 0, :]                             # (B, 4*HS)
        if t == 0:
            gates = gx_t + y0Wy                  # h == 0 at t == 0
        else:
            gates = gx_t + jnp.dot(h, Ueff, preferred_element_type=jnp.float32) + gb

        # Two full-vreg EUP passes; slice i/f/o and g from the results.
        sig = jax.nn.sigmoid(gates)                                           # (B, 4*HS)
        tnh = jnp.tanh(gates)
        i_t = sig[:, :HS]
        f_t = sig[:, HS:2 * HS]
        o_t = sig[:, 3 * HS:]
        g_t = tnh[:, 2 * HS:3 * HS]

        c = f_t * c + i_t * g_t
        h = o_t * jnp.tanh(c)
        h_steps.append(h)

    # Lane-dense single stores: hidden_seq as (B, S*HS), final y once.
    hseq_ref[...] = jnp.concatenate(h_steps, axis=-1)                         # (B, S*HS)
    y_out_ref[...] = (
        jnp.dot(h, fcwT_ref[...], preferred_element_type=jnp.float32) + fcb_ref[...]
    )                                                                         # (B, O)


# ------------------------------------- Wrapper ------------------------------------------

@jax.jit
def temporal_lstm_forward(H, y0, params):
    """Returns (y_final (B,O), hidden_seq (B,S,HS), betas (B,S,S))."""
    B, S, D = H.shape
    HS = params["U"].shape[0]
    O = params["fc_w"].shape[0]
    G = 4 * HS

    ba = params["ba"].reshape(1, S)
    bias = params["bias"].reshape(1, G)
    fcb = params["fc_b"].reshape(1, O)
    fcwT = params["fc_w"].T                      # (HS, O)
    Wy = params["Wy"]                            # (O, G)

    # Weight-only fold: y_{t-1} @ Wy == h_{t-1} @ (fc_w.T @ Wy) + fc_b @ Wy
    Ueff = params["U"] + jnp.dot(fcwT, Wy)       # (HS, G)
    gb = jnp.dot(fcb, Wy)                        # (1, G)

    H_flat = H.reshape(B * S, D)

    y_final, hseq_flat, betas_flat = pl.pallas_call(
        _temporal_lstm_kernel,
        out_shape=(
            jax.ShapeDtypeStruct((B, O), jnp.float32),
            jax.ShapeDtypeStruct((B, S * HS), jnp.float32),
            jax.ShapeDtypeStruct((B * S, S), jnp.float32),
        ),
        grid_spec=pltpu.PrefetchScalarGridSpec(
            num_scalar_prefetch=0,
            grid=(1,),
            in_specs=[
                pl.BlockSpec((B * S, D), lambda i: (0, 0)),   # H, flattened (batch*time)
                pl.BlockSpec((B, O), lambda i: (0, 0)),       # y0
                pl.BlockSpec((D, S), lambda i: (0, 0)),       # Wa
                pl.BlockSpec((1, S), lambda i: (0, 0)),       # ba
                pl.BlockSpec((S, S), lambda i: (0, 0)),       # Va
                pl.BlockSpec((D, G), lambda i: (0, 0)),       # W
                pl.BlockSpec((1, G), lambda i: (0, 0)),       # bias
                pl.BlockSpec((O, G), lambda i: (0, 0)),       # Wy (only for y0 @ Wy)
                pl.BlockSpec((HS, G), lambda i: (0, 0)),      # Ueff = U + fc_w.T @ Wy
                pl.BlockSpec((1, G), lambda i: (0, 0)),       # gb = fc_b @ Wy
                pl.BlockSpec((HS, O), lambda i: (0, 0)),      # fc_w.T
                pl.BlockSpec((1, O), lambda i: (0, 0)),       # fc_b
            ],
            out_specs=(
                pl.BlockSpec((B, O), lambda i: (0, 0)),       # final y
                pl.BlockSpec((B, S * HS), lambda i: (0, 0)),  # hidden_seq (lane-dense slab)
                pl.BlockSpec((B * S, S), lambda i: (0, 0)),   # betas
            ),
            scratch_shapes=[pltpu.VMEM((B, S, G), jnp.float32)],  # gates_x staging (no HBM trip)
        ),
        compiler_params=pltpu.CompilerParams(
            dimension_semantics=("arbitrary",),
        ),
    )(H_flat, y0, params["Wa"], ba, params["Va"], params["W"], bias,
      Wy, Ueff, gb, fcwT, fcb)

    return y_final, hseq_flat.reshape(B, S, HS), betas_flat.reshape(B, S, S)


# ------------------------------------ Reference ------------------------------------------

def reference_forward(H, y0, params):
    """Pure-JAX replica of the PyTorch forward for validation."""
    B, S, D = H.shape
    HS = params["U"].shape[0]
    Wa, Ua, ba, Va = params["Wa"], params["Ua"], params["ba"], params["Va"]
    W, U, bias, Wy = params["W"], params["U"], params["bias"], params["Wy"]
    fc_w, fc_b = params["fc_w"], params["fc_b"]

    s_t = jnp.zeros((B, HS), jnp.float32)            # never updated (as in PyTorch)
    h_l = jnp.zeros((B, HS), jnp.float32)
    c_l = jnp.zeros((B, HS), jnp.float32)
    y = y0
    betas, hs = [], []
    for t in range(S):
        h_t = H[:, t, :]
        beta = jnp.tanh(h_t @ Wa + s_t @ Ua + ba) @ Va
        beta = jax.nn.softmax(beta, axis=1)
        betas.append(beta)
        h_att = jnp.sum(beta[:, :, None] * H, axis=1)
        gates = h_att @ W + h_l @ U + y @ Wy + bias
        i_t = jax.nn.sigmoid(gates[:, :HS])
        f_t = jax.nn.sigmoid(gates[:, HS:2 * HS])
        g_t = jnp.tanh(gates[:, 2 * HS:3 * HS])
        o_t = jax.nn.sigmoid(gates[:, 3 * HS:])
        c_l = f_t * c_l + i_t * g_t
        h_l = o_t * jnp.tanh(c_l)
        hs.append(h_l)
        y = h_l @ fc_w.T + fc_b
    # betas stacked batch-major (B, S, S) to match the kernel's chosen layout
    # (the PyTorch module returns a python list of per-step (B, S) tensors).
    return y, jnp.stack(hs, axis=1), jnp.stack(betas, axis=1)


def make_params(key, input_dim, hidden_dim, seq_len, output_dim):
    stdv = 1.0 / math.sqrt(hidden_dim)
    ks = jax.random.split(key, 10)
    u = lambda k, shape: jax.random.uniform(k, shape, jnp.float32, -stdv, stdv)
    return {
        "Wa": u(ks[0], (input_dim, seq_len)),
        "Ua": u(ks[1], (hidden_dim, seq_len)),      # unused (s_t stays zero), kept for fidelity
        "ba": u(ks[2], (seq_len,)),
        "Va": u(ks[3], (seq_len, seq_len)),
        "W": u(ks[4], (input_dim, 4 * hidden_dim)),
        "U": u(ks[5], (hidden_dim, 4 * hidden_dim)),
        "bias": u(ks[6], (4 * hidden_dim,)),
        "Wy": u(ks[7], (output_dim, 4 * hidden_dim)),
        "fc_w": u(ks[8], (output_dim, hidden_dim)),
        "fc_b": u(ks[9], (output_dim,)),
    }


if __name__ == "__main__":
    B, S, D, HS, O = 2, 8, 4, 32, 4

    key = jax.random.PRNGKey(0)
    kp, kh, ky = jax.random.split(key, 3)
    params = make_params(kp, D, HS, S, O)
    H = jax.random.normal(kh, (B, S, D), jnp.float32)
    y0 = jax.random.normal(ky, (B, O), jnp.float32)

    y_f, hseq, betas = temporal_lstm_forward(H, y0, params)
    jax.block_until_ready((y_f, hseq, betas))

    y_r, hseq_r, betas_r = reference_forward(H, y0, params)
    assert jnp.allclose(y_f, y_r, atol=1e-4, rtol=1e-4), "y mismatch"
    assert jnp.allclose(hseq, hseq_r, atol=1e-4, rtol=1e-4), "hidden_seq mismatch"
    assert jnp.allclose(betas, betas_r, atol=1e-4, rtol=1e-4), "beta mismatch"

    print("KERNEL_OK")
</pallas_src>

<mosaic_0001>
module attributes {stable_mosaic.version = 11 : i64} {
  func.func @_temporal_lstm_kernel(%arg0: i32, %arg1: memref<16x4xf32, #tpu.memory_space<vmem>>, %arg2: memref<2x4xf32, #tpu.memory_space<vmem>>, %arg3: memref<4x8xf32, #tpu.memory_space<vmem>>, %arg4: memref<1x8xf32, #tpu.memory_space<vmem>>, %arg5: memref<8x8xf32, #tpu.memory_space<vmem>>, %arg6: memref<4x128xf32, #tpu.memory_space<vmem>>, %arg7: memref<1x128xf32, #tpu.memory_space<vmem>>, %arg8: memref<4x128xf32, #tpu.memory_space<vmem>>, %arg9: memref<32x128xf32, #tpu.memory_space<vmem>>, %arg10: memref<1x128xf32, #tpu.memory_space<vmem>>, %arg11: memref<32x4xf32, #tpu.memory_space<vmem>>, %arg12: memref<1x4xf32, #tpu.memory_space<vmem>>, %arg13: memref<2x4xf32, #tpu.memory_space<vmem>>, %arg14: memref<2x256xf32, #tpu.memory_space<vmem>>, %arg15: memref<16x8xf32, #tpu.memory_space<vmem>>, %arg16: memref<2x8x128xf32, #tpu.memory_space<vmem>>) attributes {dimension_semantics = [#tpu.dimension_semantics<arbitrary>], iteration_bounds = array<i64: 1>, scalar_prefetch = 0 : i64, scratch_operands = 1 : i64, tpu.core_type = #tpu.core_type<tc>, window_params = [{pipeline_mode = #tpu.pipeline_mode<synchronous>, transform_indices = @transform_0, window_bounds = array<i64: 16, 4>}, {pipeline_mode = #tpu.pipeline_mode<synchronous>, transform_indices = @transform_1, window_bounds = array<i64: 2, 4>}, {pipeline_mode = #tpu.pipeline_mode<synchronous>, transform_indices = @transform_2, window_bounds = array<i64: 4, 8>}, {pipeline_mode = #tpu.pipeline_mode<synchronous>, transform_indices = @transform_3, window_bounds = array<i64: 1, 8>}, {pipeline_mode = #tpu.pipeline_mode<synchronous>, transform_indices = @transform_4, window_bounds = array<i64: 8, 8>}, {pipeline_mode = #tpu.pipeline_mode<synchronous>, transform_indices = @transform_5, window_bounds = array<i64: 4, 128>}, {pipeline_mode = #tpu.pipeline_mode<synchronous>, transform_indices = @transform_6, window_bounds = array<i64: 1, 128>}, {pipeline_mode = #tpu.pipeline_mode<synchronous>, transform_indices = @transform_7, window_bounds = array<i64: 4, 128>}, {pipeline_mode = #tpu.pipeline_mode<synchronous>, transform_indices = @transform_8, window_bounds = array<i64: 32, 128>}, {pipeline_mode = #tpu.pipeline_mode<synchronous>, transform_indices = @transform_9, window_bounds = array<i64: 1, 128>}, {pipeline_mode = #tpu.pipeline_mode<synchronous>, transform_indices = @transform_10, window_bounds = array<i64: 32, 4>}, {pipeline_mode = #tpu.pipeline_mode<synchronous>, transform_indices = @transform_11, window_bounds = array<i64: 1, 4>}, {pipeline_mode = #tpu.pipeline_mode<synchronous>, transform_indices = @transform_12, window_bounds = array<i64: 2, 4>}, {pipeline_mode = #tpu.pipeline_mode<synchronous>, transform_indices = @transform_13, window_bounds = array<i64: 2, 256>}, {pipeline_mode = #tpu.pipeline_mode<synchronous>, transform_indices = @transform_14, window_bounds = array<i64: 16, 8>}]} {
    %c0 = arith.constant 0 : index
    %c0_0 = arith.constant 0 : index
    %0 = vector.load %arg1[%c0, %c0_0] : memref<16x4xf32, #tpu.memory_space<vmem>>, vector<16x4xf32>
    %c0_1 = arith.constant 0 : index
    %c0_2 = arith.constant 0 : index
    %1 = vector.load %arg3[%c0_1, %c0_2] : memref<4x8xf32, #tpu.memory_space<vmem>>, vector<4x8xf32>
    %cst = arith.constant dense<0.000000e+00> : vector<16x8xf32>
    %2 = tpu.matmul %0, %1, %cst {dimension_numbers = #tpu.dot_dimension_numbers<[1], [0], [0], [1], [0, 0, 1, 1], [], []>} : vector<16x4xf32>, vector<4x8xf32>, vector<16x8xf32> -> vector<16x8xf32>
    %c0_3 = arith.constant 0 : index
    %c0_4 = arith.constant 0 : index
    %3 = vector.load %arg4[%c0_3, %c0_4] : memref<1x8xf32, #tpu.memory_space<vmem>>, vector<1x8xf32>
    %4 = vector.broadcast %3 : vector<1x8xf32> to vector<16x8xf32>
    %5 = arith.addf %2, %4 : vector<16x8xf32>
    %6 = math.tanh %5 : vector<16x8xf32>
    %c0_5 = arith.constant 0 : index
    %c0_6 = arith.constant 0 : index
    %7 = vector.load %arg5[%c0_5, %c0_6] : memref<8x8xf32, #tpu.memory_space<vmem>>, vector<8x8xf32>
    %cst_7 = arith.constant dense<0.000000e+00> : vector<16x8xf32>
    %8 = tpu.matmul %6, %7, %cst_7 {dimension_numbers = #tpu.dot_dimension_numbers<[1], [0], [0], [1], [0, 0, 1, 1], [], []>} : vector<16x8xf32>, vector<8x8xf32>, vector<16x8xf32> -> vector<16x8xf32>
    %cst_8 = arith.constant dense<0xFF800000> : vector<16xf32>
    %9 = vector.multi_reduction <maximumf>, %8, %cst_8 [1] : vector<16x8xf32> to vector<16xf32>
    %10 = vector.shape_cast %9 : vector<16xf32> to vector<16x1xf32>
    %11 = vector.broadcast %10 : vector<16x1xf32> to vector<16x8xf32>
    %12 = arith.subf %8, %11 : vector<16x8xf32>
    %13 = math.exp %12 : vector<16x8xf32>
    %cst_9 = arith.constant dense<0.000000e+00> : vector<16xf32>
    %14 = vector.multi_reduction <add>, %13, %cst_9 [1] : vector<16x8xf32> to vector<16xf32>
    %15 = vector.shape_cast %14 : vector<16xf32> to vector<16x1xf32>
    %16 = vector.broadcast %15 : vector<16x1xf32> to vector<16x8xf32>
    %17 = arith.divf %13, %16 : vector<16x8xf32>
    %c0_10 = arith.constant 0 : index
    %c0_11 = arith.constant 0 : index
    %18 = vector.load %arg15[%c0_10, %c0_11] : memref<16x8xf32, #tpu.memory_space<vmem>>, vector<16x8xf32>
    tpu.vector_store %arg15[%c0_10, %c0_11], %17 {strides = array<i32>} : memref<16x8xf32, #tpu.memory_space<vmem>>, vector<16x8xf32>,
    %19 = vector.extract_strided_slice %0 {offsets = [0, 0], sizes = [8, 4], strides = [1, 1]} : vector<16x4xf32> to vector<8x4xf32>
    %20 = vector.extract_strided_slice %17 {offsets = [0, 0], sizes = [8, 8], strides = [1, 1]} : vector<16x8xf32> to vector<8x8xf32>
    %cst_12 = arith.constant dense<0.000000e+00> : vector<8x4xf32>
    %21 = tpu.matmul %20, %19, %cst_12 {dimension_numbers = #tpu.dot_dimension_numbers<[1], [0], [0], [1], [0, 0, 1, 1], [], []>} : vector<8x8xf32>, vector<8x4xf32>, vector<8x4xf32> -> vector<8x4xf32>
    %22 = vector.extract_strided_slice %0 {offsets = [8, 0], sizes = [8, 4], strides = [1, 1]} : vector<16x4xf32> to vector<8x4xf32>
    %23 = vector.extract_strided_slice %17 {offsets = [8, 0], sizes = [8, 8], strides = [1, 1]} : vector<16x8xf32> to vector<8x8xf32>
    %cst_13 = arith.constant dense<0.000000e+00> : vector<8x4xf32>
    %24 = tpu.matmul %23, %22, %cst_13 {dimension_numbers = #tpu.dot_dimension_numbers<[1], [0], [0], [1], [0, 0, 1, 1], [], []>} : vector<8x8xf32>, vector<8x4xf32>, vector<8x4xf32> -> vector<8x4xf32>
    %25 = tpu.concatenate %21, %24 in 0 : vector<8x4xf32>, vector<8x4xf32> -> vector<16x4xf32>
    %c0_14 = arith.constant 0 : index
    %c0_15 = arith.constant 0 : index
    %26 = vector.load %arg6[%c0_14, %c0_15] : memref<4x128xf32, #tpu.memory_space<vmem>>, vector<4x128xf32>
    %cst_16 = arith.constant dense<0.000000e+00> : vector<16x128xf32>
    %27 = tpu.matmul %25, %26, %cst_16 {dimension_numbers = #tpu.dot_dimension_numbers<[1], [0], [0], [1], [0, 0, 1, 1], [], []>} : vector<16x4xf32>, vector<4x128xf32>, vector<16x128xf32> -> vector<16x128xf32>
    %c0_17 = arith.constant 0 : index
    %c0_18 = arith.constant 0 : index
    %28 = vector.load %arg7[%c0_17, %c0_18] : memref<1x128xf32, #tpu.memory_space<vmem>>, vector<1x128xf32>
    %29 = vector.broadcast %28 : vector<1x128xf32> to vector<16x128xf32>
    %30 = arith.addf %27, %29 : vector<16x128xf32>
    %31 = vector.extract_strided_slice %30 {offsets = [0, 0], sizes = [8, 128], strides = [1, 1]} : vector<16x128xf32> to vector<8x128xf32>
    %c0_19 = arith.constant 0 : index
    %c0_20 = arith.constant 0 : index
    %c0_21 = arith.constant 0 : index
    %32 = vector.load %arg16[%c0_19, %c0_20, %c0_21] : memref<2x8x128xf32, #tpu.memory_space<vmem>>, vector<1x8x128xf32>
    %33 = vector.shape_cast %32 : vector<1x8x128xf32> to vector<8x128xf32>
    %34 = vector.shape_cast %31 : vector<8x128xf32> to vector<1x8x128xf32>
    tpu.vector_store %arg16[%c0_19, %c0_20, %c0_21], %34 {strides = array<i32>} : memref<2x8x128xf32, #tpu.memory_space<vmem>>, vector<1x8x128xf32>,
    %35 = vector.extract_strided_slice %30 {offsets = [8, 0], sizes = [8, 128], strides = [1, 1]} : vector<16x128xf32> to vector<8x128xf32>
    %c1 = arith.constant 1 : index
    %c0_22 = arith.constant 0 : index
    %c0_23 = arith.constant 0 : index
    %36 = vector.load %arg16[%c1, %c0_22, %c0_23] : memref<2x8x128xf32, #tpu.memory_space<vmem>>, vector<1x8x128xf32>
    %37 = vector.shape_cast %36 : vector<1x8x128xf32> to vector<8x128xf32>
    %38 = vector.shape_cast %35 : vector<8x128xf32> to vector<1x8x128xf32>
    tpu.vector_store %arg16[%c1, %c0_22, %c0_23], %38 {strides = array<i32>} : memref<2x8x128xf32, #tpu.memory_space<vmem>>, vector<1x8x128xf32>,
    %c0_24 = arith.constant 0 : index
    %c0_25 = arith.constant 0 : index
    %39 = vector.load %arg9[%c0_24, %c0_25] : memref<32x128xf32, #tpu.memory_space<vmem>>, vector<32x128xf32>
    %c0_26 = arith.constant 0 : index
    %c0_27 = arith.constant 0 : index
    %40 = vector.load %arg10[%c0_26, %c0_27] : memref<1x128xf32, #tpu.memory_space<vmem>>, vector<1x128xf32>
    %c0_28 = arith.constant 0 : index
    %c0_29 = arith.constant 0 : index
    %41 = vector.load %arg2[%c0_28, %c0_29] : memref<2x4xf32, #tpu.memory_space<vmem>>, vector<2x4xf32>
    %c0_30 = arith.constant 0 : index
    %c0_31 = arith.constant 0 : index
    %42 = vector.load %arg8[%c0_30, %c0_31] : memref<4x128xf32, #tpu.memory_space<vmem>>, vector<4x128xf32>
    %cst_32 = arith.constant dense<0.000000e+00> : vector<2x128xf32>
    %43 = tpu.matmul %41, %42, %cst_32 {dimension_numbers = #tpu.dot_dimension_numbers<[1], [0], [0], [1], [0, 0, 1, 1], [], []>} : vector<2x4xf32>, vector<4x128xf32>, vector<2x128xf32> -> vector<2x128xf32>
    %cst_33 = arith.constant 0.000000e+00 : f32
    %44 = vector.broadcast %cst_33 : f32 to vector<2x32xf32>
    %c0_34 = arith.constant 0 : index
    %c0_35 = arith.constant 0 : index
    %c0_36 = arith.constant 0 : index
    %45 = vector.load %arg16[%c0_34, %c0_35, %c0_36] : memref<2x8x128xf32, #tpu.memory_space<vmem>>, vector<2x1x128xf32>
    %46 = vector.shape_cast %45 : vector<2x1x128xf32> to vector<2x128xf32>
    %47 = arith.addf %46, %43 : vector<2x128xf32>
    %48 = arith.negf %47 : vector<2x128xf32>
    %49 = math.exp %48 : vector<2x128xf32>
    %cst_37 = arith.constant 1.000000e+00 : f32
    %50 = vector.broadcast %cst_37 : f32 to vector<2x128xf32>
    %51 = arith.addf %50, %49 : vector<2x128xf32>
    %52 = arith.divf %50, %51 : vector<2x128xf32>
    %53 = math.tanh %47 : vector<2x128xf32>
    %54 = vector.extract_strided_slice %52 {offsets = [0, 0], sizes = [2, 32], strides = [1, 1]} : vector<2x128xf32> to vector<2x32xf32>
    %55 = vector.extract_strided_slice %52 {offsets = [0, 32], sizes = [2, 32], strides = [1, 1]} : vector<2x128xf32> to vector<2x32xf32>
    %56 = vector.extract_strided_slice %52 {offsets = [0, 96], sizes = [2, 32], strides = [1, 1]} : vector<2x128xf32> to vector<2x32xf32>
    %57 = vector.extract_strided_slice %53 {offsets = [0, 64], sizes = [2, 32], strides = [1, 1]} : vector<2x128xf32> to vector<2x32xf32>
    %58 = arith.mulf %55, %44 : vector<2x32xf32>
    %59 = arith.mulf %54, %57 : vector<2x32xf32>
    %60 = arith.addf %58, %59 : vector<2x32xf32>
    %61 = math.tanh %60 : vector<2x32xf32>
    %62 = arith.mulf %56, %61 : vector<2x32xf32>
    %c0_38 = arith.constant 0 : index
    %c1_39 = arith.constant 1 : index
    %c0_40 = arith.constant 0 : index
    %63 = vector.load %arg16[%c0_38, %c1_39, %c0_40] : memref<2x8x128xf32, #tpu.memory_space<vmem>>, vector<2x1x128xf32>
    %64 = vector.shape_cast %63 : vector<2x1x128xf32> to vector<2x128xf32>
    %cst_41 = arith.constant dense<0.000000e+00> : vector<2x128xf32>
    %65 = tpu.matmul %62, %39, %cst_41 {dimension_numbers = #tpu.dot_dimension_numbers<[1], [0], [0], [1], [0, 0, 1, 1], [], []>} : vector<2x32xf32>, vector<32x128xf32>, vector<2x128xf32> -> vector<2x128xf32>
    %66 = arith.addf %64, %65 : vector<2x128xf32>
    %67 = vector.broadcast %40 : vector<1x128xf32> to vector<2x128xf32>
    %68 = arith.addf %66, %67 : vector<2x128xf32>
    %69 = arith.negf %68 : vector<2x128xf32>
    %70 = math.exp %69 : vector<2x128xf32>
    %cst_42 = arith.constant 1.000000e+00 : f32
    %71 = vector.broadcast %cst_42 : f32 to vector<2x128xf32>
    %72 = arith.addf %71, %70 : vector<2x128xf32>
    %73 = arith.divf %71, %72 : vector<2x128xf32>
    %74 = math.tanh %68 : vector<2x128xf32>
    %75 = vector.extract_strided_slice %73 {offsets = [0, 0], sizes = [2, 32], strides = [1, 1]} : vector<2x128xf32> to vector<2x32xf32>
    %76 = vector.extract_strided_slice %73 {offsets = [0, 32], sizes = [2, 32], strides = [1, 1]} : vector<2x128xf32> to vector<2x32xf32>
    %77 = vector.extract_strided_slice %73 {offsets = [0, 96], sizes = [2, 32], strides = [1, 1]} : vector<2x128xf32> to vector<2x32xf32>
    %78 = vector.extract_strided_slice %74 {offsets = [0, 64], sizes = [2, 32], strides = [1, 1]} : vector<2x128xf32> to vector<2x32xf32>
    %79 = arith.mulf %76, %60 : vector<2x32xf32>
    %80 = arith.mulf %75, %78 : vector<2x32xf32>
    %81 = arith.addf %79, %80 : vector<2x32xf32>
    %82 = math.tanh %81 : vector<2x32xf32>
    %83 = arith.mulf %77, %82 : vector<2x32xf32>
    %c0_43 = arith.constant 0 : index
    %c2 = arith.constant 2 : index
    %c0_44 = arith.constant 0 : index
    %84 = vector.load %arg16[%c0_43, %c2, %c0_44] : memref<2x8x128xf32, #tpu.memory_space<vmem>>, vector<2x1x128xf32>
    %85 = vector.shape_cast %84 : vector<2x1x128xf32> to vector<2x128xf32>
    %cst_45 = arith.constant dense<0.000000e+00> : vector<2x128xf32>
    %86 = tpu.matmul %83, %39, %cst_45 {dimension_numbers = #tpu.dot_dimension_numbers<[1], [0], [0], [1], [0, 0, 1, 1], [], []>} : vector<2x32xf32>, vector<32x128xf32>, vector<2x128xf32> -> vector<2x128xf32>
    %87 = arith.addf %85, %86 : vector<2x128xf32>
    %88 = vector.broadcast %40 : vector<1x128xf32> to vector<2x128xf32>
    %89 = arith.addf %87, %88 : vector<2x128xf32>
    %90 = arith.negf %89 : vector<2x128xf32>
    %91 = math.exp %90 : vector<2x128xf32>
    %cst_46 = arith.constant 1.000000e+00 : f32
    %92 = vector.broadcast %cst_46 : f32 to vector<2x128xf32>
    %93 = arith.addf %92, %91 : vector<2x128xf32>
    %94 = arith.divf %92, %93 : vector<2x128xf32>
    %95 = math.tanh %89 : vector<2x128xf32>
    %96 = vector.extract_strided_slice %94 {offsets = [0, 0], sizes = [2, 32], strides = [1, 1]} : vector<2x128xf32> to vector<2x32xf32>
    %97 = vector.extract_strided_slice %94 {offsets = [0, 32], sizes = [2, 32], strides = [1, 1]} : vector<2x128xf32> to vector<2x32xf32>
    %98 = vector.extract_strided_slice %94 {offsets = [0, 96], sizes = [2, 32], strides = [1, 1]} : vector<2x128xf32> to vector<2x32xf32>
    %99 = vector.extract_strided_slice %95 {offsets = [0, 64], sizes = [2, 32], strides = [1, 1]} : vector<2x128xf32> to vector<2x32xf32>
    %100 = arith.mulf %97, %81 : vector<2x32xf32>
    %101 = arith.mulf %96, %99 : vector<2x32xf32>
    %102 = arith.addf %100, %101 : vector<2x32xf32>
    %103 = math.tanh %102 : vector<2x32xf32>
    %104 = arith.mulf %98, %103 : vector<2x32xf32>
    %c0_47 = arith.constant 0 : index
    %c3 = arith.constant 3 : index
    %c0_48 = arith.constant 0 : index
    %105 = vector.load %arg16[%c0_47, %c3, %c0_48] : memref<2x8x128xf32, #tpu.memory_space<vmem>>, vector<2x1x128xf32>
    %106 = vector.shape_cast %105 : vector<2x1x128xf32> to vector<2x128xf32>
    %cst_49 = arith.constant dense<0.000000e+00> : vector<2x128xf32>
    %107 = tpu.matmul %104, %39, %cst_49 {dimension_numbers = #tpu.dot_dimension_numbers<[1], [0], [0], [1], [0, 0, 1, 1], [], []>} : vector<2x32xf32>, vector<32x128xf32>, vector<2x128xf32> -> vector<2x128xf32>
    %108 = arith.addf %106, %107 : vector<2x128xf32>
    %109 = vector.broadcast %40 : vector<1x128xf32> to vector<2x128xf32>
    %110 = arith.addf %108, %109 : vector<2x128xf32>
    %111 = arith.negf %110 : vector<2x128xf32>
    %112 = math.exp %111 : vector<2x128xf32>
    %cst_50 = arith.constant 1.000000e+00 : f32
    %113 = vector.broadcast %cst_50 : f32 to vector<2x128xf32>
    %114 = arith.addf %113, %112 : vector<2x128xf32>
    %115 = arith.divf %113, %114 : vector<2x128xf32>
    %116 = math.tanh %110 : vector<2x128xf32>
    %117 = vector.extract_strided_slice %115 {offsets = [0, 0], sizes = [2, 32], strides = [1, 1]} : vector<2x128xf32> to vector<2x32xf32>
    %118 = vector.extract_strided_slice %115 {offsets = [0, 32], sizes = [2, 32], strides = [1, 1]} : vector<2x128xf32> to vector<2x32xf32>
    %119 = vector.extract_strided_slice %115 {offsets = [0, 96], sizes = [2, 32], strides = [1, 1]} : vector<2x128xf32> to vector<2x32xf32>
    %120 = vector.extract_strided_slice %116 {offsets = [0, 64], sizes = [2, 32], strides = [1, 1]} : vector<2x128xf32> to vector<2x32xf32>
    %121 = arith.mulf %118, %102 : vector<2x32xf32>
    %122 = arith.mulf %117, %120 : vector<2x32xf32>
    %123 = arith.addf %121, %122 : vector<2x32xf32>
    %124 = math.tanh %123 : vector<2x32xf32>
    %125 = arith.mulf %119, %124 : vector<2x32xf32>
    %c0_51 = arith.constant 0 : index
    %c4 = arith.constant 4 : index
    %c0_52 = arith.constant 0 : index
    %126 = vector.load %arg16[%c0_51, %c4, %c0_52] : memref<2x8x128xf32, #tpu.memory_space<vmem>>, vector<2x1x128xf32>
    %127 = vector.shape_cast %126 : vector<2x1x128xf32> to vector<2x128xf32>
    %cst_53 = arith.constant dense<0.000000e+00> : vector<2x128xf32>
    %128 = tpu.matmul %125, %39, %cst_53 {dimension_numbers = #tpu.dot_dimension_numbers<[1], [0], [0], [1], [0, 0, 1, 1], [], []>} : vector<2x32xf32>, vector<32x128xf32>, vector<2x128xf32> -> vector<2x128xf32>
    %129 = arith.addf %127, %128 : vector<2x128xf32>
    %130 = vector.broadcast %40 : vector<1x128xf32> to vector<2x128xf32>
    %131 = arith.addf %129, %130 : vector<2x128xf32>
    %132 = arith.negf %131 : vector<2x128xf32>
    %133 = math.exp %132 : vector<2x128xf32>
    %cst_54 = arith.constant 1.000000e+00 : f32
    %134 = vector.broadcast %cst_54 : f32 to vector<2x128xf32>
    %135 = arith.addf %134, %133 : vector<2x128xf32>
    %136 = arith.divf %134, %135 : vector<2x128xf32>
    %137 = math.tanh %131 : vector<2x128xf32>
    %138 = vector.extract_strided_slice %136 {offsets = [0, 0], sizes = [2, 32], strides = [1, 1]} : vector<2x128xf32> to vector<2x32xf32>
    %139 = vector.extract_strided_slice %136 {offsets = [0, 32], sizes = [2, 32], strides = [1, 1]} : vector<2x128xf32> to vector<2x32xf32>
    %140 = vector.extract_strided_slice %136 {offsets = [0, 96], sizes = [2, 32], strides = [1, 1]} : vector<2x128xf32> to vector<2x32xf32>
    %141 = vector.extract_strided_slice %137 {offsets = [0, 64], sizes = [2, 32], strides = [1, 1]} : vector<2x128xf32> to vector<2x32xf32>
    %142 = arith.mulf %139, %123 : vector<2x32xf32>
    %143 = arith.mulf %138, %141 : vector<2x32xf32>
    %144 = arith.addf %142, %143 : vector<2x32xf32>
    %145 = math.tanh %144 : vector<2x32xf32>
    %146 = arith.mulf %140, %145 : vector<2x32xf32>
    %c0_55 = arith.constant 0 : index
    %c5 = arith.constant 5 : index
    %c0_56 = arith.constant 0 : index
    %147 = vector.load %arg16[%c0_55, %c5, %c0_56] : memref<2x8x128xf32, #tpu.memory_space<vmem>>, vector<2x1x128xf32>
    %148 = vector.shape_cast %147 : vector<2x1x128xf32> to vector<2x128xf32>
    %cst_57 = arith.constant dense<0.000000e+00> : vector<2x128xf32>
    %149 = tpu.matmul %146, %39, %cst_57 {dimension_numbers = #tpu.dot_dimension_numbers<[1], [0], [0], [1], [0, 0, 1, 1], [], []>} : vector<2x32xf32>, vector<32x128xf32>, vector<2x128xf32> -> vector<2x128xf32>
    %150 = arith.addf %148, %149 : vector<2x128xf32>
    %151 = vector.broadcast %40 : vector<1x128xf32> to vector<2x128xf32>
    %152 = arith.addf %150, %151 : vector<2x128xf32>
    %153 = arith.negf %152 : vector<2x128xf32>
    %154 = math.exp %153 : vector<2x128xf32>
    %cst_58 = arith.constant 1.000000e+00 : f32
    %155 = vector.broadcast %cst_58 : f32 to vector<2x128xf32>
    %156 = arith.addf %155, %154 : vector<2x128xf32>
    %157 = arith.divf %155, %156 : vector<2x128xf32>
    %158 = math.tanh %152 : vector<2x128xf32>
    %159 = vector.extract_strided_slice %157 {offsets = [0, 0], sizes = [2, 32], strides = [1, 1]} : vector<2x128xf32> to vector<2x32xf32>
    %160 = vector.extract_strided_slice %157 {offsets = [0, 32], sizes = [2, 32], strides = [1, 1]} : vector<2x128xf32> to vector<2x32xf32>
    %161 = vector.extract_strided_slice %157 {offsets = [0, 96], sizes = [2, 32], strides = [1, 1]} : vector<2x128xf32> to vector<2x32xf32>
    %162 = vector.extract_strided_slice %158 {offsets = [0, 64], sizes = [2, 32], strides = [1, 1]} : vector<2x128xf32> to vector<2x32xf32>
    %163 = arith.mulf %160, %144 : vector<2x32xf32>
    %164 = arith.mulf %159, %162 : vector<2x32xf32>
    %165 = arith.addf %163, %164 : vector<2x32xf32>
    %166 = math.tanh %165 : vector<2x32xf32>
    %167 = arith.mulf %161, %166 : vector<2x32xf32>
    %c0_59 = arith.constant 0 : index
    %c6 = arith.constant 6 : index
    %c0_60 = arith.constant 0 : index
    %168 = vector.load %arg16[%c0_59, %c6, %c0_60] : memref<2x8x128xf32, #tpu.memory_space<vmem>>, vector<2x1x128xf32>
    %169 = vector.shape_cast %168 : vector<2x1x128xf32> to vector<2x128xf32>
    %cst_61 = arith.constant dense<0.000000e+00> : vector<2x128xf32>
    %170 = tpu.matmul %167, %39, %cst_61 {dimension_numbers = #tpu.dot_dimension_numbers<[1], [0], [0], [1], [0, 0, 1, 1], [], []>} : vector<2x32xf32>, vector<32x128xf32>, vector<2x128xf32> -> vector<2x128xf32>
    %171 = arith.addf %169, %170 : vector<2x128xf32>
    %172 = vector.broadcast %40 : vector<1x128xf32> to vector<2x128xf32>
    %173 = arith.addf %171, %172 : vector<2x128xf32>
    %174 = arith.negf %173 : vector<2x128xf32>
    %175 = math.exp %174 : vector<2x128xf32>
    %cst_62 = arith.constant 1.000000e+00 : f32
    %176 = vector.broadcast %cst_62 : f32 to vector<2x128xf32>
    %177 = arith.addf %176, %175 : vector<2x128xf32>
    %178 = arith.divf %176, %177 : vector<2x128xf32>
    %179 = math.tanh %173 : vector<2x128xf32>
    %180 = vector.extract_strided_slice %178 {offsets = [0, 0], sizes = [2, 32], strides = [1, 1]} : vector<2x128xf32> to vector<2x32xf32>
    %181 = vector.extract_strided_slice %178 {offsets = [0, 32], sizes = [2, 32], strides = [1, 1]} : vector<2x128xf32> to vector<2x32xf32>
    %182 = vector.extract_strided_slice %178 {offsets = [0, 96], sizes = [2, 32], strides = [1, 1]} : vector<2x128xf32> to vector<2x32xf32>
    %183 = vector.extract_strided_slice %179 {offsets = [0, 64], sizes = [2, 32], strides = [1, 1]} : vector<2x128xf32> to vector<2x32xf32>
    %184 = arith.mulf %181, %165 : vector<2x32xf32>
    %185 = arith.mulf %180, %183 : vector<2x32xf32>
    %186 = arith.addf %184, %185 : vector<2x32xf32>
    %187 = math.tanh %186 : vector<2x32xf32>
    %188 = arith.mulf %182, %187 : vector<2x32xf32>
    %c0_63 = arith.constant 0 : index
    %c7 = arith.constant 7 : index
    %c0_64 = arith.constant 0 : index
    %189 = vector.load %arg16[%c0_63, %c7, %c0_64] : memref<2x8x128xf32, #tpu.memory_space<vmem>>, vector<2x1x128xf32>
    %190 = vector.shape_cast %189 : vector<2x1x128xf32> to vector<2x128xf32>
    %cst_65 = arith.constant dense<0.000000e+00> : vector<2x128xf32>
    %191 = tpu.matmul %188, %39, %cst_65 {dimension_numbers = #tpu.dot_dimension_numbers<[1], [0], [0], [1], [0, 0, 1, 1], [], []>} : vector<2x32xf32>, vector<32x128xf32>, vector<2x128xf32> -> vector<2x128xf32>
    %192 = arith.addf %190, %191 : vector<2x128xf32>
    %193 = vector.broadcast %40 : vector<1x128xf32> to vector<2x128xf32>
    %194 = arith.addf %192, %193 : vector<2x128xf32>
    %195 = arith.negf %194 : vector<2x128xf32>
    %196 = math.exp %195 : vector<2x128xf32>
    %cst_66 = arith.constant 1.000000e+00 : f32
    %197 = vector.broadcast %cst_66 : f32 to vector<2x128xf32>
    %198 = arith.addf %197, %196 : vector<2x128xf32>
    %199 = arith.divf %197, %198 : vector<2x128xf32>
    %200 = math.tanh %194 : vector<2x128xf32>
    %201 = vector.extract_strided_slice %199 {offsets = [0, 0], sizes = [2, 32], strides = [1, 1]} : vector<2x128xf32> to vector<2x32xf32>
    %202 = vector.extract_strided_slice %199 {offsets = [0, 32], sizes = [2, 32], strides = [1, 1]} : vector<2x128xf32> to vector<2x32xf32>
    %203 = vector.extract_strided_slice %199 {offsets = [0, 96], sizes = [2, 32], strides = [1, 1]} : vector<2x128xf32> to vector<2x32xf32>
    %204 = vector.extract_strided_slice %200 {offsets = [0, 64], sizes = [2, 32], strides = [1, 1]} : vector<2x128xf32> to vector<2x32xf32>
    %205 = arith.mulf %202, %186 : vector<2x32xf32>
    %206 = arith.mulf %201, %204 : vector<2x32xf32>
    %207 = arith.addf %205, %206 : vector<2x32xf32>
    %208 = math.tanh %207 : vector<2x32xf32>
    %209 = arith.mulf %203, %208 : vector<2x32xf32>
    %210 = tpu.concatenate %62, %83, %104, %125, %146, %167, %188, %209 in 1 : vector<2x32xf32>, vector<2x32xf32>, vector<2x32xf32>, vector<2x32xf32>, vector<2x32xf32>, vector<2x32xf32>, vector<2x32xf32>, vector<2x32xf32> -> vector<2x256xf32>
    %c0_67 = arith.constant 0 : index
    %c0_68 = arith.constant 0 : index
    %211 = vector.load %arg14[%c0_67, %c0_68] : memref<2x256xf32, #tpu.memory_space<vmem>>, vector<2x256xf32>
    tpu.vector_store %arg14[%c0_67, %c0_68], %210 {strides = array<i32>} : memref<2x256xf32, #tpu.memory_space<vmem>>, vector<2x256xf32>,
    %c0_69 = arith.constant 0 : index
    %c0_70 = arith.constant 0 : index
    %212 = vector.load %arg11[%c0_69, %c0_70] : memref<32x4xf32, #tpu.memory_space<vmem>>, vector<32x4xf32>
    %cst_71 = arith.constant dense<0.000000e+00> : vector<2x4xf32>
    %213 = tpu.matmul %209, %212, %cst_71 {dimension_numbers = #tpu.dot_dimension_numbers<[1], [0], [0], [1], [0, 0, 1, 1], [], []>} : vector<2x32xf32>, vector<32x4xf32>, vector<2x4xf32> -> vector<2x4xf32>
    %c0_72 = arith.constant 0 : index
    %c0_73 = arith.constant 0 : index
    %214 = vector.load %arg12[%c0_72, %c0_73] : memref<1x4xf32, #tpu.memory_space<vmem>>, vector<1x4xf32>
    %215 = vector.broadcast %214 : vector<1x4xf32> to vector<2x4xf32>
    %216 = arith.addf %213, %215 : vector<2x4xf32>
    %c0_74 = arith.constant 0 : index
    %c0_75 = arith.constant 0 : index
    %217 = vector.load %arg13[%c0_74, %c0_75] : memref<2x4xf32, #tpu.memory_space<vmem>>, vector<2x4xf32>
    tpu.vector_store %arg13[%c0_74, %c0_75], %216 {strides = array<i32>} : memref<2x4xf32, #tpu.memory_space<vmem>>, vector<2x4xf32>,
    return
  }
  func.func @transform_0(%arg0: i32) -> (i32, i32) {
    %c0_i32 = arith.constant 0 : i32
    %c0_i32_0 = arith.constant 0 : i32
    %c0_i32_1 = arith.constant 0 : i32
    return %c0_i32, %c0_i32_0 : i32, i32
  }
  func.func @transform_1(%arg0: i32) -> (i32, i32) {
    %c0_i32 = arith.constant 0 : i32
    %c0_i32_0 = arith.constant 0 : i32
    %c0_i32_1 = arith.constant 0 : i32
    return %c0_i32, %c0_i32_0 : i32, i32
  }
  func.func @transform_2(%arg0: i32) -> (i32, i32) {
    %c0_i32 = arith.constant 0 : i32
    %c0_i32_0 = arith.constant 0 : i32
    %c0_i32_1 = arith.constant 0 : i32
    return %c0_i32, %c0_i32_0 : i32, i32
  }
  func.func @transform_3(%arg0: i32) -> (i32, i32) {
    %c0_i32 = arith.constant 0 : i32
    %c0_i32_0 = arith.constant 0 : i32
    %c0_i32_1 = arith.constant 0 : i32
    return %c0_i32, %c0_i32_0 : i32, i32
  }
  func.func @transform_4(%arg0: i32) -> (i32, i32) {
    %c0_i32 = arith.constant 0 : i32
    %c0_i32_0 = arith.constant 0 : i32
    %c0_i32_1 = arith.constant 0 : i32
    return %c0_i32, %c0_i32_0 : i32, i32
  }
  func.func @transform_5(%arg0: i32) -> (i32, i32) {
    %c0_i32 = arith.constant 0 : i32
    %c0_i32_0 = arith.constant 0 : i32
    %c0_i32_1 = arith.constant 0 : i32
    return %c0_i32, %c0_i32_0 : i32, i32
  }
  func.func @transform_6(%arg0: i32) -> (i32, i32) {
    %c0_i32 = arith.constant 0 : i32
    %c0_i32_0 = arith.constant 0 : i32
    %c0_i32_1 = arith.constant 0 : i32
    return %c0_i32, %c0_i32_0 : i32, i32
  }
  func.func @transform_7(%arg0: i32) -> (i32, i32) {
    %c0_i32 = arith.constant 0 : i32
    %c0_i32_0 = arith.constant 0 : i32
    %c0_i32_1 = arith.constant 0 : i32
    return %c0_i32, %c0_i32_0 : i32, i32
  }
  func.func @transform_8(%arg0: i32) -> (i32, i32) {
    %c0_i32 = arith.constant 0 : i32
    %c0_i32_0 = arith.constant 0 : i32
    %c0_i32_1 = arith.constant 0 : i32
    return %c0_i32, %c0_i32_0 : i32, i32
  }
  func.func @transform_9(%arg0: i32) -> (i32, i32) {
    %c0_i32 = arith.constant 0 : i32
    %c0_i32_0 = arith.constant 0 : i32
    %c0_i32_1 = arith.constant 0 : i32
    return %c0_i32, %c0_i32_0 : i32, i32
  }
  func.func @transform_10(%arg0: i32) -> (i32, i32) {
    %c0_i32 = arith.constant 0 : i32
    %c0_i32_0 = arith.constant 0 : i32
    %c0_i32_1 = arith.constant 0 : i32
    return %c0_i32, %c0_i32_0 : i32, i32
  }
  func.func @transform_11(%arg0: i32) -> (i32, i32) {
    %c0_i32 = arith.constant 0 : i32
    %c0_i32_0 = arith.constant 0 : i32
    %c0_i32_1 = arith.constant 0 : i32
    return %c0_i32, %c0_i32_0 : i32, i32
  }
  func.func @transform_12(%arg0: i32) -> (i32, i32) {
    %c0_i32 = arith.constant 0 : i32
    %c0_i32_0 = arith.constant 0 : i32
    %c0_i32_1 = arith.constant 0 : i32
    return %c0_i32, %c0_i32_0 : i32, i32
  }
  func.func @transform_13(%arg0: i32) -> (i32, i32) {
    %c0_i32 = arith.constant 0 : i32
    %c0_i32_0 = arith.constant 0 : i32
    %c0_i32_1 = arith.constant 0 : i32
    return %c0_i32, %c0_i32_0 : i32, i32
  }
  func.func @transform_14(%arg0: i32) -> (i32, i32) {
    %c0_i32 = arith.constant 0 : i32
    %c0_i32_0 = arith.constant 0 : i32
    %c0_i32_1 = arith.constant 0 : i32
    return %c0_i32, %c0_i32_0 : i32, i32
  }
}

</mosaic_0001>

<bundles_post_ra>
// kernel: temporal_lstm_forward.1
= control target key start
LH: loop header
LB: loop body
LE: loop exit
PB: predicated region body
PF: predicated region fallthrough
CT: control target
= control target key end

     0   :  { %20 = vsyncpa [#allocation4], 0  ;;  %vm63_vm0 = vcmask 1043456   ;;  %vm56_vm1 = vcmask 31744   ;;  %s2588_s0 = inlined_call_operand.vmem [shape: f32[16,4], index: 0, kind: input, shape index: {}]   ;;  %s2589_s1 = inlined_call_operand.vmem [shape: f32[2,4], index: 1, kind: input, shape index: {}]   ;;  %s2590_s2 = inlined_call_operand.vmem [shape: f32[4,8], index: 2, kind: input, shape index: {}]   ;;  %s2591_s3 = inlined_call_operand.vmem [shape: f32[1,8], index: 3, kind: input, shape index: {}]   ;;  %s2592_s4 = inlined_call_operand.vmem [shape: f32[8,8], index: 4, kind: input, shape index: {}]   ;;  %s2593_s5 = inlined_call_operand.vmem [shape: f32[4,128], index: 5, kind: input, shape index: {}]   ;;  %s2594_s6 = inlined_call_operand.vmem [shape: f32[1,128], index: 6, kind: input, shape index: {}]   ;;  %s2595_s7 = inlined_call_operand.vmem [shape: f32[4,128], index: 7, kind: input, shape index: {}]   ;;  %s2596_s8 = inlined_call_operand.vmem [shape: f32[32,128], index: 8, kind: input, shape index: {}]   ;;  %s2597_s9 = inlined_call_operand.vmem [shape: f32[1,128], index: 9, kind: input, shape index: {}]   ;;  %s2598_s10 = inlined_call_operand.vmem [shape: f32[32,4], index: 10, kind: input, shape index: {}]   ;;  %s2599_s11 = inlined_call_operand.vmem [shape: f32[1,4], index: 11, kind: input, shape index: {}]   ;;  %s2600_s12 = inlined_call_operand.hbm [shape: f32[2,4], index: 12, kind: output, shape index: {0}]   ;;  %s2601_s13 = inlined_call_operand.vmem [shape: f32[2,256], index: 13, kind: output, shape index: {1}]   ;;  %s2602_s14 = inlined_call_operand.hbm [shape: f32[16,8], index: 14, kind: output, shape index: {2}]  }
   0x1   :  { %v48_v0 = vld [vmem:[%s2590_s2] sm:$0xf]  ;;  %v47_v2 = vld [vmem:[%s2588_s0 + $0x8] sm:$0xff] }
   0x2   :  { %v46_v1 = vld [vmem:[%s2588_s0] sm:$0xff]  ;;  %1848 = vmatprep.subr.msk.mxu0 %vm63_vm0, %v48_v0 }
   0x3   :  { %1850 = vmatprep.mubr.msk.f32.mxu0 %vm56_vm1, %v46_v1 }
   0x4   :  { %21 = vsyncpa [#allocation6], 0  ;;  %1849 = vmatpush3.msk.msra.mxu0 %vm63_vm0, %v48_v0  ;;  %v144_v3 = vld [vmem:[%s2592_s4] sm:$0xff]  ;;  %vm145_vm2 = vcmask 64512   ;;  %v2212_v25 = vmov 0.0   ;;  %vm2213_vm3 = vmmov 0  }
   0x5   :  { %1851 = vmatmul.mubr.msk.f32.vlgmr.msra.gmra.mrb[0].mxu0 %vm56_vm1, %v47_v2  ;;  %1853 = vmatprep.subr.mxu1 %v144_v3  ;;  %v1752_v4 = vld [vmem:[%s2591_s3] ss:$0 sm:$0xff]  ;;  %vm636_vm4 = vcmask 1041409   ;;  %vm640_vm5 = vcmask 261120   ;;  %s2217_s4 = smov 96   ;;  %vm1612_vm6 = vcmask 523264  }
   0x6   :  { %1854 = vmatpush3.msra.mxu1 %v144_v3  ;;  %1858 = vmatprep.subr.mxu0 %v2212_v25  ;;  %v397_v32 = vld [vmem:[%s2593_s5] sm:$0xf]  ;;  %vm1614_vm7 = vcmask 785408   ;;  %s2218_s23 = smov [#allocation5]  }
   0x7   :  { %1863 = vmatprep.subr.mxu1 %v2212_v25  ;;  %1859 = vmatpush3.msra.mxu0 %v46_v1  ;;  %v498_v33 = vld [vmem:[%s2595_s7] sm:$0xf]  ;;  %s2214_s7 = smov 64   ;;  %s1735_s24 = sshll.u32 %s2218_s23, 4  ;;  %s1736_s24 = int_to_ptr.vmem [resolvable:$true] %s1735_s24 }
   0x8   :  { %1860 = vmatprep.mubr.msk.f32.mxu0 %vm2213_vm3, %v2212_v25  ;;  %1868 = vmatprep.subr.msk.mxu0 %vm63_vm0, %v397_v32  ;;  %v497_v34 = vld [vmem:[%s2589_s1] sm:$0x3]  ;;  %s2164_s1 = scalar_lea.vmem %s1736_s24, 256  ;;  %p2169_p1 = scmp.lt.s32.totalorder %s1736_s24, %s1736_s24 }
   0x9   :  { %v1760_v41 = vld [vmem:[%s2594_s6] ss:$0 sm:$0xff]  ;;  %s2215_s6 = smov 32   ;;  %p2165_p0 = scmp.ne.s32.totalorder %s1736_s24, %s2164_s1 }
   0xa   :  { %p2170_p2 = scmp.lt.s32.totalorder %s2164_s1, %s2164_s1 }
   0xc   :  { %p2171_p3 = por %p2170_p2, %p2169_p1 }
   0xe   :  { %p2172_p4 = pnand %p2171_p3, %p2165_p0 }
  0xd8   :  { %v1852_v5 = vpop.f32.mrb[0].mxu0 }
  0xd9   :  { %v139_v6 = vadd.f32 %v1852_v5, %v1752_v4  ;;  %v133_v7 = vpop.f32.mrb[1].mxu0 }
  0xda   :  { %v134_v8 = vadd.f32 %v1752_v4, %v133_v7  ;;  %v492_v7 = vld [vmem:[%s2596_s8] sm:$0xff] }
  0xdc   :  { %2024 = vtanh.f32 %v134_v8  ;;  %v493_v8 = vld [vmem:[%s2596_s8 + $0x8] sm:$0xff] }
  0xdd   :  { %2026 = vtanh.f32 %v139_v6 }
  0xe6   :  { %v2025_v9 = vpop.eup %2024 }
  0xe7   :  { %v2027_v10 = vpop.eup %2026  ;;  %1855 = vmatprep.mubr.msk.f32.mxu1 %vm145_vm2, %v2025_v9  ;;  %v494_v9 = vld [vmem:[%s2596_s8 + $0x10] sm:$0xff] }
  0xe8   :  { %1856 = vmatmul.mubr.msk.f32.vlgmr.msra.gmra.mrb[0].mxu1 %vm145_vm2, %v2027_v10  ;;  %v2216_v10 = vmov 0.0|0.0  }
  0xe9   :  { %1864 = vmatpush3.msra.mxu1 %v47_v2  ;;  %1865 = vmatprep.mubr.msk.f32.mxu1 %vm2213_vm3, %v2212_v25 }
  0xea   :  { %1873 = vmatprep.subr.mxu1 %v2212_v25 }
 0x1bb   :  { %v1857_v11 = vpop.f32.mrb[0].mxu1 }
 0x1bc   :  { %v218_v12 = vpop.f32.mrb[1].mxu1  ;;  %v230_v14 = vsel %vm145_vm2, %v1857_v11, -inf }
 0x1bd   :  { %v227_v13 = vsel %vm145_vm2, %v218_v12, -inf }
 0x1be   :  { %228 = vmax.xlane.f32.xlu0 %v227_v13 }
 0x1c2   :  { %231 = vmax.xlane.f32.xlu0 %v230_v14 }
 0x24b   :  { %v229_v15 = vpop.xlane.xlu0 %228 }
 0x24c   :  { %v233_v16 = vsub.f32 %v218_v12, %v229_v15  ;;  %v495_v12 = vld [vmem:[%s2596_s8 + $0x18] sm:$0xff] }
 0x24d   :  { %v2384_v13 = vpack.c.bf16 %v495_v12, %v494_v9 }
 0x24e   :  { %v235_v17 = vmul.f32 1.442695, %v233_v16 }
 0x24f   :  { %v232_v18 = vpop.xlane.xlu0 %231 }
 0x250   :  { %2028 = vpow2.f32 %v235_v17  ;;  %v234_v19 = vsub.f32 %v1857_v11, %v232_v18  ;;  %v2377_v11 = vpack.c.bf16 %v493_v8, %v492_v7 }
 0x252   :  { %v237_v20 = vmul.f32 1.442695, %v234_v19 }
 0x254   :  { %2030 = vpow2.f32 %v237_v20 }
 0x25a   :  { %v2029_v21 = vpop.eup %2028 }
 0x25b   :  { %v239_v22 = vsel %vm145_vm2, %v2029_v21, 0.0 }
 0x25c   :  { %240 = vadd.xlane.f32.xlu1 %v239_v22 }
 0x25e   :  { %v2031_v23 = vpop.eup %2030 }
 0x25f   :  { %v242_v24 = vsel %vm145_vm2, %v2031_v23, 0.0 }
 0x260   :  { %243 = vadd.xlane.f32.xlu1 %v242_v24 }
 0x2e9   :  { %v241_v26 = vpop.xlane.xlu1 %240 }
 0x2ea   :  { %2032 = vrcp.f32 %v241_v26 }
 0x2ed   :  { %v244_v27 = vpop.xlane.xlu1 %243 }
 0x2ee   :  { %2034 = vrcp.f32 %v244_v27 }
 0x2f4   :  { %v2033_v28 = vpop.eup %2032 }
 0x2f5   :  { %v246_v29 = vmul.f32 %v2033_v28, %v2029_v21 }
 0x2f7   :  { %249 = vst.msk [vmem:[#allocation5] sm:$0xff] %vm145_vm2, %v246_v29  ;;  %1861 = vmatmul.mubr.msk.f32.vlgmr.msra.gmra.mrb[2].mxu0 %vm145_vm2, %v246_v29 }
 0x2f8   :  { %v2035_v30 = vpop.eup %2034  ;;  %1869 = vmatpush3.msk.msra.mxu0 %vm63_vm0, %v397_v32 }
 0x2f9   :  { %v248_v31 = vmul.f32 %v2035_v30, %v2031_v23  ;;  %1966 = vmatprep.subr.bf16.mxu0 %v2216_v10  ;;  %v2410_v23 = vld [vmem:[%s2597_s9] ss:$0 sm:$0xff] }
 0x2fb   :  { %250 = vst.msk [vmem:[#allocation5 + $0x8] sm:$0xff] %vm145_vm2, %v248_v31  ;;  %1866 = vmatmul.mubr.msk.f32.vlgmr.msra.gmra.mrb[2].mxu1 %vm145_vm2, %v248_v31 }
 0x2fc   :  { %1875 = vmatprep.mubr.msk.f32.mxu1 %vm2213_vm3, %v2212_v25  ;;  %1874 = vmatpush3.msk.msra.mxu1 %vm63_vm0, %v498_v33 }
 0x2fd   :  { %1972 = vmatprep.subr.bf16.mxu1 %v2216_v10 }
 0x2ff   :  { %1876 = vmatmul.mubr.msk.f32.vlgmr.msra.gmra.mrb[4].mxu1 %vm56_vm1, %v497_v34 }
 0x300   :  { %1897 = vmatprep.mubr.msk.f32.mxu1 %vm2213_vm3, %v2212_v25  ;;  %1974 = vmatpush3.bf16.msra.mxu1 %v2377_v11 }
 0x301   :  { %1975 = vmatprep.subr.bf16.mxu1 %v2216_v10 }
 0x304   :  { %1977 = vmatpush3.bf16.msra.mxu1 %v2384_v13 }
 0x305   :  { %1984 = vmatprep.subr.bf16.mxu1 %v2216_v10 }
 0x3ca   :  { %v320_v35 = vpop.f32.mrb[2].mxu0 }
 0x3cb   :  { %v1862_v36 = vpop.f32.mrb[3].mxu0  ;;  %1870 = vmatprep.mubr.msk.f32.mxu0 %vm56_vm1, %v320_v35 }
 0x3ce   :  { %v393_v37 = vpop.f32.mrb[2].mxu1 }
 0x3cf   :  { %v1867_v38 = vpop.f32.mrb[3].mxu1  ;;  %1871 = vmatmul.mubr.msk.f32.vlgmr.msra.gmra.mrb[4].mxu0 %vm56_vm1, %v393_v37 }
 0x3d0   :  { %1886 = vmatprep.mubr.msk.f32.mxu0 %vm2213_vm3, %v2212_v25  ;;  %1968 = vmatpush3.bf16.msra.mxu0 %v2377_v11 }
 0x3d1   :  { %1969 = vmatprep.subr.bf16.mxu0 %v2216_v10 }
 0x3d2   :  { %v571_v39 = vpop.f32.mrb[4].mxu1 }
 0x3d3   :  { %v1877_v40 = vpop.f32.mrb[5].mxu1  ;;  %v578_v46 = vrot.slane %v571_v39, 1 }
 0x3d4   :  { %1971 = vmatpush3.bf16.msra.mxu0 %v2384_v13 }
 0x3d5   :  { %1978 = vmatprep.subr.bf16.mxu0 %v2216_v10 }
 0x4a2   :  { %v1872_v42 = vpop.f32.mrb[4].mxu0 }
 0x4a3   :  { %v486_v43 = vadd.f32 %v1872_v42, %v1760_v41  ;;  %v480_v44 = vpop.f32.mrb[5].mxu0 }
 0x4a4   :  { %v481_v45 = vadd.f32 %v1760_v41, %v480_v44 }
 0x4a5   :  { %491 = vst [vmem:[#allocation2 + $0x8] sm:$0xff] %v486_v43 }
 0x4a6   :  { %489 = vst [vmem:[#allocation2] sm:$0xff] %v481_v45 }
 0x4ac   :  { %v576_v47 = vld [vmem:[#allocation2 + $0x8] sm:$0x1]  ;;  %v632_v30 = vld [vmem:[#allocation2 + $0x9] sm:$0x1] }
 0x4ad   :  { %v575_v48 = vld [vmem:[#allocation2] sm:$0x1]  ;;  %v582_v49 = vadd.f32 %v578_v46, %v576_v47  ;;  %v631_v24 = vld [vmem:[#allocation2 + $0x1] sm:$0x1] }
 0x4ae   :  { %v581_v50 = vadd.f32 %v575_v48, %v571_v39 }
 0x4af   :  { %2036 = vtanh.f32 %v582_v49  ;;  %v1767_v53 = vmul.f32 -1.442695, %v582_v49 }
 0x4b0   :  { %2038 = vtanh.f32 %v581_v50  ;;  %v1766_v54 = vmul.f32 -1.442695, %v581_v50 }
 0x4b1   :  { %2040 = vpow2.f32 %v1767_v53 }
 0x4b2   :  { %2042 = vpow2.f32 %v1766_v54 }
 0x4b9   :  { %v2037_v51 = vpop.eup %2036 }
 0x4ba   :  { %v2039_v52 = vpop.eup %2038  ;;  %603 = vrot.lane.b32.xlu0 %v2037_v51, %s2214_s7 }
 0x4bb   :  { %601 = vrot.lane.b32.xlu1 %v2039_v52, %s2214_s7  ;;  %v2041_v55 = vpop.eup %2040 }
 0x4bc   :  { %v590_v56 = vadd.f32 1.0, %v2041_v55  ;;  %v2043_v57 = vpop.eup %2042 }
 0x4bd   :  { %v589_v58 = vadd.f32 1.0, %v2043_v57 }
 0x4be   :  { %2044 = vrcp.f32 %v590_v56 }
 0x4bf   :  { %2046 = vrcp.f32 %v589_v58 }
 0x4c8   :  { %v2045_v59 = vpop.eup %2044 }
 0x4c9   :  { %v2047_v63 = vpop.eup %2046  ;;  %v598_v1 = vmul.f32 0.0, %v2045_v59 }
 0x4ca   :  { %v597_v4 = vmul.f32 0.0, %v2047_v63 }
 0x52c   :  { %v604_v60 = vpop.permute.xlu0 %603 }
 0x52d   :  { %v608_v61 = vmul.f32 %v2045_v59, %v604_v60  ;;  %v602_v62 = vpop.permute.xlu1 %601 }
 0x52e   :  { %v607_v0 = vmul.f32 %v2047_v63, %v602_v62 }
 0x52f   :  { %613 = vrot.lane.b32.xlu1 %v608_v61, %s2215_s6 }
 0x533   :  { %611 = vrot.lane.b32.xlu1 %v607_v0, %s2215_s6 }
 0x5a1   :  { %v614_v2 = vpop.permute.xlu1 %613 }
 0x5a2   :  { %v2361_v3 = vadd.f32 %v614_v2, %v598_v1 }
 0x5a4   :  { %2048 = vtanh.f32 %v2361_v3 }
 0x5a5   :  { %v612_v5 = vpop.permute.xlu1 %611 }
 0x5a6   :  { %v2364_v6 = vadd.f32 %v612_v5, %v597_v4  ;;  %v776_v4 = vld [vmem:[#allocation2 + $0xa] sm:$0x1] }
 0x5a8   :  { %2050 = vtanh.f32 %v2364_v6 }
 0x5ae   :  { %v2049_v14 = vpop.eup %2048 }
 0x5af   :  { %625 = vrot.lane.b32.xlu0 %v2049_v14, %s2214_s7 }
 0x5b2   :  { %v2051_v15 = vpop.eup %2050 }
 0x5b3   :  { %623 = vrot.lane.b32.xlu1 %v2051_v15, %s2214_s7 }
 0x621   :  { %v626_v16 = vpop.permute.xlu0 %625 }
 0x622   :  { %v630_v17 = vmul.f32 %v2045_v59, %v626_v16 }
 0x624   :  { %v635_v19 = vrot.slane %v630_v17, 7 }
 0x625   :  { %v624_v18 = vpop.permute.xlu1 %623 }
 0x626   :  { %v629_v20 = vmul.f32 %v2047_v63, %v624_v18  ;;  %v775_v63 = vld [vmem:[#allocation2 + $0x2] sm:$0x1] }
 0x628   :  { %v637_v21 = vsel %vm636_vm4, %v635_v19, %v629_v20 }
 0x629   :  { %638 = vrot.lane.b32.xlu0 %v637_v21, %s2215_s6 }
 0x69b   :  { %v2397_v22 = vpop.permute.xlu0 %638 }
 0x69c   :  { %1887 = vmatmul.mubr.msk.f32.vlgmr.msra.gmra.mrb[6].mxu0 %vm640_vm5, %v2397_v22 }
 0x69d   :  { %1980 = vmatpush3.bf16.msra.mxu0 %v2377_v11  ;;  %1908 = vmatprep.mubr.msk.f32.mxu0 %vm2213_vm3, %v2212_v25 }
 0x69e   :  { %1981 = vmatprep.subr.bf16.mxu0 %v2216_v10 }
 0x6a1   :  { %1983 = vmatpush3.bf16.msra.mxu0 %v2384_v13 }
 0x6a2   :  { %1990 = vmatprep.subr.bf16.mxu0 %v2216_v10 }
 0x76f   :  { %v709_v26 = vpop.f32.mrb[6].mxu0 }
 0x770   :  { %v714_v27 = vrot.slane %v709_v26, 1  ;;  %v717_v28 = vadd.f32 %v709_v26, %v631_v24  ;;  %v1888_v29 = vpop.f32.mrb[7].mxu0 }
 0x772   :  { %v718_v31 = vadd.f32 %v714_v27, %v632_v30  ;;  %v725_v32 = vadd.f32 %v2410_v23, %v717_v28 }
 0x774   :  { %v726_v33 = vadd.f32 %v2410_v23, %v718_v31  ;;  %2052 = vtanh.f32 %v725_v32  ;;  %v1770_v36 = vmul.f32 -1.442695, %v725_v32 }
 0x776   :  { %2054 = vtanh.f32 %v726_v33  ;;  %v1771_v37 = vmul.f32 -1.442695, %v726_v33 }
 0x777   :  { %2056 = vpow2.f32 %v1770_v36 }
 0x778   :  { %2058 = vpow2.f32 %v1771_v37 }
 0x77e   :  { %v2053_v34 = vpop.eup %2052 }
 0x77f   :  { %745 = vrot.lane.b32.xlu0 %v2053_v34, %s2214_s7 }
 0x780   :  { %v2055_v35 = vpop.eup %2054 }
 0x781   :  { %747 = vrot.lane.b32.xlu1 %v2055_v35, %s2214_s7  ;;  %v2057_v38 = vpop.eup %2056 }
 0x782   :  { %v2059_v39 = vpop.eup %2058  ;;  %v733_v40 = vadd.f32 1.0, %v2057_v38 }
 0x783   :  { %v734_v41 = vadd.f32 1.0, %v2059_v39 }
 0x784   :  { %2060 = vrcp.f32 %v733_v40 }
 0x785   :  { %2062 = vrcp.f32 %v734_v41 }
 0x78e   :  { %v2061_v42 = vpop.eup %2060 }
 0x78f   :  { %v2063_v45 = vpop.eup %2062  ;;  %v741_v48 = vmul.f32 %v2061_v42, %v2364_v6 }
 0x790   :  { %v742_v51 = vmul.f32 %v2063_v45, %v2361_v3 }
 0x7f1   :  { %v746_v43 = vpop.permute.xlu0 %745 }
 0x7f2   :  { %v751_v44 = vmul.f32 %v2061_v42, %v746_v43  ;;  %v911_v43 = vld [vmem:[#allocation2 + $0x3] sm:$0x1] }
 0x7f3   :  { %v748_v46 = vpop.permute.xlu1 %747 }
 0x7f4   :  { %755 = vrot.lane.b32.xlu0 %v751_v44, %s2215_s6  ;;  %v752_v47 = vmul.f32 %v2063_v45, %v748_v46 }
 0x7f6   :  { %757 = vrot.lane.b32.xlu1 %v752_v47, %s2215_s6 }
 0x866   :  { %v756_v49 = vpop.permute.xlu0 %755 }
 0x867   :  { %v761_v50 = vadd.f32 %v756_v49, %v741_v48  ;;  %v912_v48 = vld [vmem:[#allocation2 + $0xb] sm:$0x1] }
 0x868   :  { %v758_v52 = vpop.permute.xlu1 %757 }
 0x869   :  { %2064 = vtanh.f32 %v761_v50  ;;  %v762_v53 = vadd.f32 %v758_v52, %v742_v51 }
 0x86b   :  { %2066 = vtanh.f32 %v762_v53 }
 0x873   :  { %v2065_v54 = vpop.eup %2064 }
 0x874   :  { %767 = vrot.lane.b32.xlu0 %v2065_v54, %s2214_s7 }
 0x875   :  { %v2067_v55 = vpop.eup %2066 }
 0x876   :  { %769 = vrot.lane.b32.xlu1 %v2067_v55, %s2214_s7 }
 0x8e6   :  { %v768_v56 = vpop.permute.xlu0 %767 }
 0x8e7   :  { %v773_v59 = vmul.f32 %v2061_v42, %v768_v56 }
 0x8e8   :  { %v770_v57 = vpop.permute.xlu1 %769 }
 0x8e9   :  { %v774_v58 = vmul.f32 %v2063_v45, %v770_v57 }
 0x8eb   :  { %v779_v60 = vrot.slane %v774_v58, 7 }
 0x8ed   :  { %v2423_v61 = vsel %vm636_vm4, %v779_v60, %v773_v59 }
 0x8ee   :  { %781 = vrot.lane.b32.xlu1 %v2423_v61, %s2215_s6 }
 0x960   :  { %v782_v62 = vpop.permute.xlu1 %781 }
 0x961   :  { %1898 = vmatmul.mubr.msk.f32.vlgmr.msra.gmra.mrb[6].mxu1 %vm640_vm5, %v782_v62 }
 0x962   :  { %1986 = vmatpush3.bf16.msra.mxu1 %v2377_v11  ;;  %1919 = vmatprep.mubr.msk.f32.mxu1 %vm2213_vm3, %v2212_v25 }
 0x963   :  { %1987 = vmatprep.subr.bf16.mxu1 %v2216_v10 }
 0x966   :  { %1989 = vmatpush3.bf16.msra.mxu1 %v2384_v13 }
 0x967   :  { %1996 = vmatprep.subr.bf16.mxu1 %v2216_v10 }
 0xa34   :  { %v851_v0 = vpop.f32.mrb[6].mxu1 }
 0xa35   :  { %v856_v1 = vrot.slane %v851_v0, 1  ;;  %v859_v2 = vadd.f32 %v851_v0, %v775_v63  ;;  %v1899_v3 = vpop.f32.mrb[7].mxu1 }
 0xa37   :  { %v860_v5 = vadd.f32 %v856_v1, %v776_v4  ;;  %v861_v6 = vadd.f32 %v2410_v23, %v859_v2 }
 0xa39   :  { %v862_v7 = vadd.f32 %v2410_v23, %v860_v5  ;;  %2068 = vtanh.f32 %v861_v6  ;;  %v1773_v12 = vmul.f32 -1.442695, %v861_v6 }
 0xa3b   :  { %2070 = vtanh.f32 %v862_v7  ;;  %v1774_v14 = vmul.f32 -1.442695, %v862_v7 }
 0xa3c   :  { %2072 = vpow2.f32 %v1773_v12 }
 0xa3d   :  { %2074 = vpow2.f32 %v1774_v14 }
 0xa43   :  { %v2069_v8 = vpop.eup %2068 }
 0xa44   :  { %881 = vrot.lane.b32.xlu1 %v2069_v8, %s2214_s7 }
 0xa45   :  { %v2071_v9 = vpop.eup %2070 }
 0xa46   :  { %883 = vrot.lane.b32.xlu0 %v2071_v9, %s2214_s7  ;;  %v2073_v15 = vpop.eup %2072 }
 0xa47   :  { %v2075_v16 = vpop.eup %2074  ;;  %v869_v17 = vadd.f32 1.0, %v2073_v15 }
 0xa48   :  { %v870_v18 = vadd.f32 1.0, %v2075_v16 }
 0xa49   :  { %2076 = vrcp.f32 %v869_v17 }
 0xa4a   :  { %2078 = vrcp.f32 %v870_v18 }
 0xa53   :  { %v2077_v19 = vpop.eup %2076 }
 0xa54   :  { %v2079_v24 = vpop.eup %2078  ;;  %v877_v28 = vmul.f32 %v2077_v19, %v761_v50 }
 0xa55   :  { %v878_v31 = vmul.f32 %v2079_v24, %v762_v53 }
 0xab6   :  { %v882_v20 = vpop.permute.xlu1 %881 }
 0xab7   :  { %v887_v21 = vmul.f32 %v2077_v19, %v882_v20 }
 0xab8   :  { %v884_v26 = vpop.permute.xlu0 %883 }
 0xab9   :  { %891 = vrot.lane.b32.xlu1 %v887_v21, %s2215_s6  ;;  %v888_v27 = vmul.f32 %v2079_v24, %v884_v26  ;;  %v1047_v21 = vld [vmem:[#allocation2 + $0x4] sm:$0x1] }
 0xabb   :  { %893 = vrot.lane.b32.xlu0 %v888_v27, %s2215_s6 }
 0xb2b   :  { %v892_v29 = vpop.permute.xlu1 %891 }
 0xb2c   :  { %v897_v30 = vadd.f32 %v892_v29, %v877_v28  ;;  %v1048_v29 = vld [vmem:[#allocation2 + $0xc] sm:$0x1] }
 0xb2d   :  { %v894_v32 = vpop.permute.xlu0 %893 }
 0xb2e   :  { %2080 = vtanh.f32 %v897_v30  ;;  %v898_v33 = vadd.f32 %v894_v32, %v878_v31 }
 0xb30   :  { %2082 = vtanh.f32 %v898_v33 }
 0xb38   :  { %v2081_v34 = vpop.eup %2080 }
 0xb39   :  { %903 = vrot.lane.b32.xlu1 %v2081_v34, %s2214_s7 }
 0xb3a   :  { %v2083_v35 = vpop.eup %2082 }
 0xb3b   :  { %905 = vrot.lane.b32.xlu0 %v2083_v35, %s2214_s7 }
 0xbab   :  { %v904_v36 = vpop.permute.xlu1 %903 }
 0xbac   :  { %v909_v39 = vmul.f32 %v2077_v19, %v904_v36 }
 0xbad   :  { %v906_v37 = vpop.permute.xlu0 %905 }
 0xbae   :  { %v910_v38 = vmul.f32 %v2079_v24, %v906_v37 }
 0xbb0   :  { %v915_v40 = vrot.slane %v910_v38, 7 }
 0xbb2   :  { %v2443_v41 = vsel %vm636_vm4, %v915_v40, %v909_v39 }
 0xbb3   :  { %917 = vrot.lane.b32.xlu0 %v2443_v41, %s2215_s6 }
 0xc25   :  { %v918_v42 = vpop.permute.xlu0 %917 }
 0xc26   :  { %1909 = vmatmul.mubr.msk.f32.vlgmr.msra.gmra.mrb[8].mxu0 %vm640_vm5, %v918_v42 }
 0xc27   :  { %1992 = vmatpush3.bf16.msra.mxu0 %v2377_v11  ;;  %1930 = vmatprep.mubr.msk.f32.mxu0 %vm2213_vm3, %v2212_v25 }
 0xc28   :  { %1993 = vmatprep.subr.bf16.mxu0 %v2216_v10 }
 0xc2b   :  { %1995 = vmatpush3.bf16.msra.mxu0 %v2384_v13 }
 0xc2c   :  { %2002 = vmatprep.subr.bf16.mxu0 %v2216_v10 }
 0xcf9   :  { %v987_v44 = vpop.f32.mrb[8].mxu0 }
 0xcfa   :  { %v992_v45 = vrot.slane %v987_v44, 1  ;;  %v995_v46 = vadd.f32 %v987_v44, %v911_v43  ;;  %v1910_v47 = vpop.f32.mrb[9].mxu0 }
 0xcfc   :  { %v996_v49 = vadd.f32 %v992_v45, %v912_v48  ;;  %v997_v50 = vadd.f32 %v2410_v23, %v995_v46 }
 0xcfe   :  { %v998_v51 = vadd.f32 %v2410_v23, %v996_v49  ;;  %2084 = vtanh.f32 %v997_v50  ;;  %v1776_v54 = vmul.f32 -1.442695, %v997_v50 }
 0xd00   :  { %2086 = vtanh.f32 %v998_v51  ;;  %v1777_v55 = vmul.f32 -1.442695, %v998_v51 }
 0xd01   :  { %2088 = vpow2.f32 %v1776_v54 }
 0xd02   :  { %2090 = vpow2.f32 %v1777_v55 }
 0xd08   :  { %v2085_v52 = vpop.eup %2084 }
 0xd09   :  { %1017 = vrot.lane.b32.xlu0 %v2085_v52, %s2214_s7 }
 0xd0a   :  { %v2087_v53 = vpop.eup %2086 }
 0xd0b   :  { %1019 = vrot.lane.b32.xlu1 %v2087_v53, %s2214_s7  ;;  %v2089_v56 = vpop.eup %2088 }
 0xd0c   :  { %v2091_v57 = vpop.eup %2090  ;;  %v1005_v58 = vadd.f32 1.0, %v2089_v56 }
 0xd0d   :  { %v1006_v59 = vadd.f32 1.0, %v2091_v57 }
 0xd0e   :  { %2092 = vrcp.f32 %v1005_v58 }
 0xd0f   :  { %2094 = vrcp.f32 %v1006_v59 }
 0xd18   :  { %v2093_v60 = vpop.eup %2092 }
 0xd19   :  { %v2095_v0 = vpop.eup %2094  ;;  %v1013_v3 = vmul.f32 %v2093_v60, %v897_v30 }
 0xd1a   :  { %v1014_v6 = vmul.f32 %v2095_v0, %v898_v33 }
 0xd7b   :  { %v1018_v62 = vpop.permute.xlu0 %1017 }
 0xd7c   :  { %v1023_v63 = vmul.f32 %v2093_v60, %v1018_v62 }
 0xd7d   :  { %v1020_v1 = vpop.permute.xlu1 %1019 }
 0xd7e   :  { %1027 = vrot.lane.b32.xlu0 %v1023_v63, %s2215_s6  ;;  %v1024_v2 = vmul.f32 %v2095_v0, %v1020_v1 }
 0xd80   :  { %1029 = vrot.lane.b32.xlu1 %v1024_v2, %s2215_s6 }
 0xdf0   :  { %v1028_v4 = vpop.permute.xlu0 %1027 }
 0xdf1   :  { %v1033_v5 = vadd.f32 %v1028_v4, %v1013_v3 }
 0xdf2   :  { %v1030_v7 = vpop.permute.xlu1 %1029 }
 0xdf3   :  { %2096 = vtanh.f32 %v1033_v5  ;;  %v1034_v8 = vadd.f32 %v1030_v7, %v1014_v6 }
 0xdf5   :  { %2098 = vtanh.f32 %v1034_v8 }
 0xdfd   :  { %v2097_v9 = vpop.eup %2096 }
 0xdfe   :  { %1039 = vrot.lane.b32.xlu0 %v2097_v9, %s2214_s7 }
 0xdff   :  { %v2099_v12 = vpop.eup %2098 }
 0xe00   :  { %1041 = vrot.lane.b32.xlu1 %v2099_v12, %s2214_s7 }
 0xe70   :  { %v1040_v14 = vpop.permute.xlu0 %1039 }
 0xe71   :  { %v1045_v17 = vmul.f32 %v2093_v60, %v1040_v14 }
 0xe72   :  { %v1042_v15 = vpop.permute.xlu1 %1041 }
 0xe73   :  { %v1046_v16 = vmul.f32 %v2095_v0, %v1042_v15  ;;  %v1183_v0 = vld [vmem:[#allocation2 + $0x5] sm:$0x1] }
 0xe75   :  { %v1051_v18 = vrot.slane %v1046_v16, 7 }
 0xe77   :  { %v2463_v19 = vsel %vm636_vm4, %v1051_v18, %v1045_v17 }
 0xe78   :  { %1053 = vrot.lane.b32.xlu1 %v2463_v19, %s2215_s6 }
 0xeea   :  { %v1054_v20 = vpop.permute.xlu1 %1053 }
 0xeeb   :  { %1920 = vmatmul.mubr.msk.f32.vlgmr.msra.gmra.mrb[8].mxu1 %vm640_vm5, %v1054_v20 }
 0xeec   :  { %1998 = vmatpush3.bf16.msra.mxu1 %v2377_v11  ;;  %1941 = vmatprep.mubr.msk.f32.mxu1 %vm2213_vm3, %v2212_v25 }
 0xeed   :  { %1999 = vmatprep.subr.bf16.mxu1 %v2216_v10 }
 0xef0   :  { %2001 = vmatpush3.bf16.msra.mxu1 %v2384_v13 }
 0xef1   :  { %2008 = vmatprep.subr.bf16.mxu1 %v2216_v10 }
 0xfbe   :  { %v1123_v24 = vpop.f32.mrb[8].mxu1 }
 0xfbf   :  { %v1128_v26 = vrot.slane %v1123_v24, 1  ;;  %v1131_v27 = vadd.f32 %v1123_v24, %v1047_v21  ;;  %v1921_v28 = vpop.f32.mrb[9].mxu1 }
 0xfc1   :  { %v1132_v30 = vadd.f32 %v1128_v26, %v1048_v29  ;;  %v1133_v31 = vadd.f32 %v2410_v23, %v1131_v27 }
 0xfc3   :  { %v1134_v32 = vadd.f32 %v2410_v23, %v1132_v30  ;;  %2100 = vtanh.f32 %v1133_v31  ;;  %v1779_v35 = vmul.f32 -1.442695, %v1133_v31 }
 0xfc5   :  { %2102 = vtanh.f32 %v1134_v32  ;;  %v1780_v36 = vmul.f32 -1.442695, %v1134_v32 }
 0xfc6   :  { %2104 = vpow2.f32 %v1779_v35 }
 0xfc7   :  { %2106 = vpow2.f32 %v1780_v36 }
 0xfcd   :  { %v2101_v33 = vpop.eup %2100 }
 0xfce   :  { %1153 = vrot.lane.b32.xlu1 %v2101_v33, %s2214_s7 }
 0xfcf   :  { %v2103_v34 = vpop.eup %2102 }
 0xfd0   :  { %1155 = vrot.lane.b32.xlu0 %v2103_v34, %s2214_s7  ;;  %v2105_v37 = vpop.eup %2104 }
 0xfd1   :  { %v2107_v38 = vpop.eup %2106  ;;  %v1141_v39 = vadd.f32 1.0, %v2105_v37 }
 0xfd2   :  { %v1142_v40 = vadd.f32 1.0, %v2107_v38 }
 0xfd3   :  { %2108 = vrcp.f32 %v1141_v39 }
 0xfd4   :  { %2110 = vrcp.f32 %v1142_v40 }
 0xfdd   :  { %v2109_v42 = vpop.eup %2108 }
 0xfde   :  { %v2111_v45 = vpop.eup %2110  ;;  %v1149_v48 = vmul.f32 %v2109_v42, %v1033_v5  ;;  %v1184_v5 = vld [vmem:[#allocation2 + $0xd] sm:$0x1] }
 0xfdf   :  { %v1150_v51 = vmul.f32 %v2111_v45, %v1034_v8 }
0x1040   :  { %v1154_v43 = vpop.permute.xlu1 %1153 }
0x1041   :  { %v1159_v44 = vmul.f32 %v2109_v42, %v1154_v43 }
0x1042   :  { %v1156_v46 = vpop.permute.xlu0 %1155 }
0x1043   :  { %1163 = vrot.lane.b32.xlu1 %v1159_v44, %s2215_s6  ;;  %v1160_v47 = vmul.f32 %v2111_v45, %v1156_v46  ;;  %v1319_v44 = vld [vmem:[#allocation2 + $0x6] sm:$0x1] }
0x1045   :  { %1165 = vrot.lane.b32.xlu0 %v1160_v47, %s2215_s6 }
0x10b5   :  { %v1164_v49 = vpop.permute.xlu1 %1163 }
0x10b6   :  { %v1169_v50 = vadd.f32 %v1164_v49, %v1149_v48  ;;  %v1320_v49 = vld [vmem:[#allocation2 + $0xe] sm:$0x1] }
0x10b7   :  { %v1166_v52 = vpop.permute.xlu0 %1165 }
0x10b8   :  { %2112 = vtanh.f32 %v1169_v50  ;;  %v1170_v53 = vadd.f32 %v1166_v52, %v1150_v51 }
0x10ba   :  { %2114 = vtanh.f32 %v1170_v53 }
0x10c2   :  { %v2113_v54 = vpop.eup %2112 }
0x10c3   :  { %1175 = vrot.lane.b32.xlu1 %v2113_v54, %s2214_s7 }
0x10c4   :  { %v2115_v55 = vpop.eup %2114 }
0x10c5   :  { %1177 = vrot.lane.b32.xlu0 %v2115_v55, %s2214_s7 }
0x1135   :  { %v1176_v56 = vpop.permute.xlu1 %1175 }
0x1136   :  { %v1181_v59 = vmul.f32 %v2109_v42, %v1176_v56 }
0x1137   :  { %v1178_v57 = vpop.permute.xlu0 %1177 }
0x1138   :  { %v1182_v58 = vmul.f32 %v2111_v45, %v1178_v57 }
0x113a   :  { %v1187_v60 = vrot.slane %v1182_v58, 7 }
0x113c   :  { %v1188_v62 = vsel %vm636_vm4, %v1187_v60, %v1181_v59 }
0x113d   :  { %1189 = vrot.lane.b32.xlu0 %v1188_v62, %s2215_s6 }
0x11af   :  { %v2484_v63 = vpop.permute.xlu0 %1189 }
0x11b0   :  { %1931 = vmatmul.mubr.msk.f32.vlgmr.msra.gmra.mrb[10].mxu0 %vm640_vm5, %v2484_v63 }
0x11b1   :  { %2004 = vmatpush3.bf16.msra.mxu0 %v2377_v11  ;;  %1952 = vmatprep.mubr.msk.f32.mxu0 %vm2213_vm3, %v2212_v25 }
0x11b2   :  { %2005 = vmatprep.subr.bf16.mxu0 %v2216_v10 }
0x11b5   :  { %2007 = vmatpush3.bf16.msra.mxu0 %v2384_v13 }
0x1283   :  { %v1259_v1 = vpop.f32.mrb[10].mxu0 }
0x1284   :  { %v1264_v2 = vrot.slane %v1259_v1, 1  ;;  %v1267_v3 = vadd.f32 %v1259_v1, %v1183_v0  ;;  %v1932_v4 = vpop.f32.mrb[11].mxu0 }
0x1286   :  { %v1268_v6 = vadd.f32 %v1264_v2, %v1184_v5  ;;  %v1269_v7 = vadd.f32 %v2410_v23, %v1267_v3 }
0x1288   :  { %v1270_v8 = vadd.f32 %v2410_v23, %v1268_v6  ;;  %2116 = vtanh.f32 %v1269_v7  ;;  %v1782_v13 = vmul.f32 -1.442695, %v1269_v7 }
0x128a   :  { %2118 = vtanh.f32 %v1270_v8  ;;  %v1783_v12 = vmul.f32 -1.442695, %v1270_v8 }
0x128b   :  { %2120 = vpow2.f32 %v1782_v13 }
0x128c   :  { %2122 = vpow2.f32 %v1783_v12 }
0x1292   :  { %v2117_v11 = vpop.eup %2116 }
0x1293   :  { %1289 = vrot.lane.b32.xlu0 %v2117_v11, %s2214_s7 }
0x1294   :  { %v2119_v9 = vpop.eup %2118 }
0x1295   :  { %1291 = vrot.lane.b32.xlu1 %v2119_v9, %s2214_s7  ;;  %v2121_v14 = vpop.eup %2120 }
0x1296   :  { %v2123_v15 = vpop.eup %2122  ;;  %v1277_v16 = vadd.f32 1.0, %v2121_v14 }
0x1297   :  { %v1278_v17 = vadd.f32 1.0, %v2123_v15 }
0x1298   :  { %2124 = vrcp.f32 %v1277_v16 }
0x1299   :  { %2126 = vrcp.f32 %v1278_v17 }
0x12a2   :  { %v2125_v18 = vpop.eup %2124 }
0x12a3   :  { %v2127_v24 = vpop.eup %2126  ;;  %v1285_v28 = vmul.f32 %v2125_v18, %v1169_v50 }
0x12a4   :  { %v1286_v31 = vmul.f32 %v2127_v24, %v1170_v53 }
0x1305   :  { %v1290_v20 = vpop.permute.xlu0 %1289 }
0x1306   :  { %v1295_v21 = vmul.f32 %v2125_v18, %v1290_v20 }
0x1307   :  { %v1292_v26 = vpop.permute.xlu1 %1291 }
0x1308   :  { %1299 = vrot.lane.b32.xlu0 %v1295_v21, %s2215_s6  ;;  %v1296_v27 = vmul.f32 %v2127_v24, %v1292_v26  ;;  %v1455_v21 = vld [vmem:[#allocation2 + $0x7] sm:$0x1] }
0x130a   :  { %1301 = vrot.lane.b32.xlu1 %v1296_v27, %s2215_s6 }
0x137a   :  { %v1300_v29 = vpop.permute.xlu0 %1299 }
0x137b   :  { %v1305_v30 = vadd.f32 %v1300_v29, %v1285_v28  ;;  %v1456_v29 = vld [vmem:[#allocation2 + $0xf] sm:$0x1] }
0x137c   :  { %v1302_v32 = vpop.permute.xlu1 %1301 }
0x137d   :  { %2128 = vtanh.f32 %v1305_v30  ;;  %v1306_v33 = vadd.f32 %v1302_v32, %v1286_v31 }
0x137f   :  { %2130 = vtanh.f32 %v1306_v33 }
0x1387   :  { %v2129_v34 = vpop.eup %2128 }
0x1388   :  { %1311 = vrot.lane.b32.xlu0 %v2129_v34, %s2214_s7 }
0x1389   :  { %v2131_v35 = vpop.eup %2130 }
0x138a   :  { %1313 = vrot.lane.b32.xlu1 %v2131_v35, %s2214_s7 }
0x13fa   :  { %v1312_v36 = vpop.permute.xlu0 %1311 }
0x13fb   :  { %v1317_v39 = vmul.f32 %v2125_v18, %v1312_v36 }
0x13fc   :  { %v1314_v37 = vpop.permute.xlu1 %1313 }
0x13fd   :  { %v1318_v38 = vmul.f32 %v2127_v24, %v1314_v37 }
0x13ff   :  { %v1323_v40 = vrot.slane %v1318_v38, 7 }
0x1401   :  { %v2502_v42 = vsel %vm636_vm4, %v1323_v40, %v1317_v39 }
0x1402   :  { %1325 = vrot.lane.b32.xlu1 %v2502_v42, %s2215_s6 }
0x1474   :  { %v1326_v43 = vpop.permute.xlu1 %1325 }
0x1475   :  { %1942 = vmatmul.mubr.msk.f32.vlgmr.msra.gmra.mrb[10].mxu1 %vm640_vm5, %v1326_v43 }
0x1476   :  { %1963 = vmatprep.mubr.msk.f32.mxu1 %vm2213_vm3, %v2212_v25 }
0x1548   :  { %v1395_v45 = vpop.f32.mrb[10].mxu1 }
0x1549   :  { %v1400_v46 = vrot.slane %v1395_v45, 1  ;;  %v1403_v47 = vadd.f32 %v1395_v45, %v1319_v44  ;;  %v1943_v48 = vpop.f32.mrb[11].mxu1 }
0x154b   :  { %v1404_v50 = vadd.f32 %v1400_v46, %v1320_v49  ;;  %v1405_v51 = vadd.f32 %v2410_v23, %v1403_v47 }
0x154d   :  { %v1406_v52 = vadd.f32 %v2410_v23, %v1404_v50  ;;  %2132 = vtanh.f32 %v1405_v51  ;;  %v1785_v25 = vmul.f32 -1.442695, %v1405_v51 }
0x154f   :  { %2134 = vtanh.f32 %v1406_v52  ;;  %v1786_v55 = vmul.f32 -1.442695, %v1406_v52 }
0x1550   :  { %2136 = vpow2.f32 %v1785_v25 }
0x1551   :  { %2138 = vpow2.f32 %v1786_v55  ;;  %v1631_v55 = vld [vmem:[%s2598_s10] sm:$0xff] }
0x1557   :  { %v2133_v53 = vpop.eup %2132 }
0x1558   :  { %1425 = vrot.lane.b32.xlu1 %v2133_v53, %s2214_s7 }
0x1559   :  { %v2135_v54 = vpop.eup %2134 }
0x155a   :  { %1427 = vrot.lane.b32.xlu0 %v2135_v54, %s2214_s7  ;;  %v2137_v56 = vpop.eup %2136 }
0x155b   :  { %v2139_v57 = vpop.eup %2138  ;;  %v1413_v58 = vadd.f32 1.0, %v2137_v56  ;;  %v1632_v56 = vld [vmem:[%s2598_s10 + $0x8] sm:$0xff] }
0x155c   :  { %v1414_v59 = vadd.f32 1.0, %v2139_v57  ;;  %v1633_v57 = vld [vmem:[%s2598_s10 + $0x10] sm:$0xff] }
0x155d   :  { %2140 = vrcp.f32 %v1413_v58  ;;  %v2009_v58 = vpack.c.bf16 %v1632_v56, %v1631_v55 }
0x155e   :  { %2142 = vrcp.f32 %v1414_v59  ;;  %v1634_v59 = vld [vmem:[%s2598_s10 + $0x18] sm:$0xff] }
0x155f   :  { %2010 = vmatpush3.bf16.msra.mxu1 %v2009_v58 }
0x1560   :  { %2011 = vmatprep.subr.bf16.mxu1 %v2216_v10 }
0x1567   :  { %v2141_v60 = vpop.eup %2140 }
0x1568   :  { %v2143_v1 = vpop.eup %2142  ;;  %v1421_v4 = vmul.f32 %v2141_v60, %v1305_v30 }
0x1569   :  { %v1422_v7 = vmul.f32 %v2143_v1, %v1306_v33 }
0x15ca   :  { %v1426_v62 = vpop.permute.xlu1 %1425 }
0x15cb   :  { %v1431_v0 = vmul.f32 %v2141_v60, %v1426_v62 }
0x15cc   :  { %v1428_v2 = vpop.permute.xlu0 %1427 }
0x15cd   :  { %1435 = vrot.lane.b32.xlu1 %v1431_v0, %s2215_s6  ;;  %v1432_v3 = vmul.f32 %v2143_v1, %v1428_v2 }
0x15cf   :  { %1437 = vrot.lane.b32.xlu0 %v1432_v3, %s2215_s6 }
0x163f   :  { %v1436_v5 = vpop.permute.xlu1 %1435 }
0x1640   :  { %v1441_v6 = vadd.f32 %v1436_v5, %v1421_v4 }
0x1641   :  { %v1438_v8 = vpop.permute.xlu0 %1437 }
0x1642   :  { %2144 = vtanh.f32 %v1441_v6  ;;  %v1442_v11 = vadd.f32 %v1438_v8, %v1422_v7 }
0x1644   :  { %2146 = vtanh.f32 %v1442_v11 }
0x164c   :  { %v2145_v9 = vpop.eup %2144 }
0x164d   :  { %1447 = vrot.lane.b32.xlu1 %v2145_v9, %s2214_s7 }
0x164e   :  { %v2147_v13 = vpop.eup %2146 }
0x164f   :  { %1449 = vrot.lane.b32.xlu0 %v2147_v13, %s2214_s7 }
0x16bf   :  { %v1448_v12 = vpop.permute.xlu1 %1447 }
0x16c0   :  { %v1453_v16 = vmul.f32 %v2141_v60, %v1448_v12  ;;  %v2012_v60 = vpack.c.bf16 %v1634_v59, %v1633_v57 }
0x16c1   :  { %v1450_v14 = vpop.permute.xlu0 %1449 }
0x16c2   :  { %v1454_v15 = vmul.f32 %v2143_v1, %v1450_v14  ;;  %2013 = vmatpush3.bf16.msra.mxu1 %v2012_v60 }
0x16c4   :  { %v1459_v17 = vrot.slane %v1454_v15, 7 }
0x16c6   :  { %v2518_v18 = vsel %vm636_vm4, %v1459_v17, %v1453_v16 }
0x16c7   :  { %1461 = vrot.lane.b32.xlu0 %v2518_v18, %s2215_s6 }
0x1739   :  { %v1462_v20 = vpop.permute.xlu0 %1461 }
0x173a   :  { %1953 = vmatmul.mubr.msk.f32.vlgmr.msra.gmra.mrb[12].mxu0 %vm640_vm5, %v1462_v20 }
0x180d   :  { %v1531_v24 = vpop.f32.mrb[12].mxu0 }
0x180e   :  { %v1536_v26 = vrot.slane %v1531_v24, 1  ;;  %v1539_v27 = vadd.f32 %v1531_v24, %v1455_v21  ;;  %v1954_v28 = vpop.f32.mrb[13].mxu0 }
0x1810   :  { %v1540_v30 = vadd.f32 %v1536_v26, %v1456_v29  ;;  %v1541_v31 = vadd.f32 %v2410_v23, %v1539_v27 }
0x1812   :  { %v1542_v32 = vadd.f32 %v2410_v23, %v1540_v30  ;;  %2148 = vtanh.f32 %v1541_v31  ;;  %v1788_v35 = vmul.f32 -1.442695, %v1541_v31 }
0x1814   :  { %2150 = vtanh.f32 %v1542_v32  ;;  %v1789_v36 = vmul.f32 -1.442695, %v1542_v32 }
0x1815   :  { %2152 = vpow2.f32 %v1788_v35 }
0x1816   :  { %2154 = vpow2.f32 %v1789_v36 }
0x181c   :  { %v2149_v33 = vpop.eup %2148 }
0x181d   :  { %1561 = vrot.lane.b32.xlu0 %v2149_v33, %s2214_s7 }
0x181e   :  { %v2151_v34 = vpop.eup %2150 }
0x181f   :  { %1563 = vrot.lane.b32.xlu1 %v2151_v34, %s2214_s7  ;;  %v2153_v37 = vpop.eup %2152 }
0x1820   :  { %v2155_v38 = vpop.eup %2154  ;;  %v1549_v39 = vadd.f32 1.0, %v2153_v37 }
0x1821   :  { %v1550_v40 = vadd.f32 1.0, %v2155_v38 }
0x1822   :  { %2156 = vrcp.f32 %v1549_v39 }
0x1823   :  { %2158 = vrcp.f32 %v1550_v40 }
0x182c   :  { %v2157_v43 = vpop.eup %2156 }
0x182d   :  { %v2159_v45 = vpop.eup %2158  ;;  %v1557_v48 = vmul.f32 %v2157_v43, %v1441_v6 }
0x182e   :  { %v1558_v51 = vmul.f32 %v2159_v45, %v1442_v11 }
0x188f   :  { %v1562_v23 = vpop.permute.xlu0 %1561 }
0x1890   :  { %v1567_v44 = vmul.f32 %v2157_v43, %v1562_v23 }
0x1891   :  { %v1564_v46 = vpop.permute.xlu1 %1563 }
0x1892   :  { %1571 = vrot.lane.b32.xlu0 %v1567_v44, %s2215_s6  ;;  %v1568_v47 = vmul.f32 %v2159_v45, %v1564_v46 }
0x1894   :  { %1573 = vrot.lane.b32.xlu1 %v1568_v47, %s2215_s6 }
0x1904   :  { %v1572_v49 = vpop.permute.xlu0 %1571 }
0x1905   :  { %v1577_v50 = vadd.f32 %v1572_v49, %v1557_v48 }
0x1906   :  { %v1574_v52 = vpop.permute.xlu1 %1573 }
0x1907   :  { %2160 = vtanh.f32 %v1577_v50  ;;  %v1578_v53 = vadd.f32 %v1574_v52, %v1558_v51 }
0x1909   :  { %2162 = vtanh.f32 %v1578_v53 }
0x1911   :  { %v2161_v54 = vpop.eup %2160 }
0x1912   :  { %1583 = vrot.lane.b32.xlu0 %v2161_v54, %s2214_s7 }
0x1913   :  { %v2163_v25 = vpop.eup %2162 }
0x1914   :  { %1585 = vrot.lane.b32.xlu1 %v2163_v25, %s2214_s7 }
0x1916   :  { %1592 = vrot.lane.b32.xlu0 %v2423_v61, %s2214_s7 }
0x191a   :  { %1595 = vrot.lane.b32.xlu0 %v2443_v41, %s2217_s4 }
0x1984   :  { %v1584_v62 = vpop.permute.xlu0 %1583 }
0x1985   :  { %v1589_v2 = vmul.f32 %v2157_v43, %v1584_v62 }
0x1986   :  { %v1586_v0 = vpop.permute.xlu1 %1585 }
0x1987   :  { %v1590_v1 = vmul.f32 %v2159_v45, %v1586_v0 }
0x1988   :  { %v1593_v4 = vpop.permute.xlu0 %1592 }
0x1989   :  { %v1608_v3 = vrot.slane %v1590_v1, 7  ;;  %v1611_v6 = vsel %vm640_vm5, %v2397_v22, %v1593_v4 }
0x198b   :  { %v1609_v61 = vsel %vm636_vm4, %v1608_v3, %v1589_v2 }
0x198c   :  { %1642 = vrot.lane.b32.xlu1 %v1609_v61, %s2215_s6  ;;  %v1596_v41 = vpop.permute.xlu0 %1595 }
0x198d   :  { %v1613_v7 = vsel %vm1612_vm6, %v1611_v6, %v1596_v41 }
0x1990   :  { %1600 = vrot.lane.b32.xlu1 %v2502_v42, %s2214_s7  ;;  %v1615_v42 = vsel %vm1614_vm7, %v1613_v7, %v2463_v19 }
0x1994   :  { %1603 = vrot.lane.b32.xlu1 %v2518_v18, %s2217_s4 }
0x19fe   :  { %v1643_v10 = vpop.permute.xlu1 %1642 }
0x19ff   :  { %1964 = vmatmul.mubr.msk.f32.vlgmr.msra.gmra.mrb[12].mxu1 %vm640_vm5, %v1643_v10 }
0x1a02   :  { %v1601_v5 = vpop.permute.xlu1 %1600 }
0x1a03   :  { %v1616_v8 = vsel %vm640_vm5, %v2484_v63, %v1601_v5 }
0x1a06   :  { %v1604_v11 = vpop.permute.xlu1 %1603 }
0x1a07   :  { %v1617_v9 = vsel %vm1612_vm6, %v1616_v8, %v1604_v11 }
0x1a08   :  { %v1618_v13 = vsel %vm1614_vm7, %v1617_v9, %v1609_v61 }
0x1a09   :  { %v1621_v12 = vcombine.low %v1615_v42, %v1618_v13 }
0x1a0b   :  { %1790 = vst.sshfl [vmem:[%s2601_s13] sm:$0x33 pattern:$0x76325410] %v1621_v12 }
0x1a0c   :  { %2175 = shalt.err (!%p2172_p4)
}
0x1a0d   :  { %s2176_s6 = scalar_lea.hbm %s2602_s14, 256 }
0x1a0e   :  { %p2177_p5 = scmp.ne.s32.totalorder %s2602_s14, %s2176_s6  ;;  %p2180_p6 = scmp.lt.u32.totalorder %s2176_s6, %s2602_s14 }
0x1a10   :  { %p2182_p7 = pnand %p2180_p6, %p2177_p5 }
0x1a12   :  { %2185 = shalt.err (!%p2182_p7)
}
0x1a13   :  { %s2219_s28 = smov 128   ;;  %s2220_s29 = smov 8   ;;  %v1791_v22 = vld [vmem:[%s2599_s11] ss:$0 sm:$0xff]  ;;  %vm1716_vm8 = vcmask 25600  }
0x1a14   :  { %1741 = dma.vmem_to_hbm [thread:$0]  %s1736_s24, 256, %s2602_s14, [#allocation6], %s2219_s28, %s2219_s28, %s2220_s29  }
0x1a15   :  { %s2221_s17 = smov [#allocation3]  }
0x1a16   :  { %s1724_s9 = sshll.u32 %s2221_s17, 4  ;;  %s1725_s9 = int_to_ptr.vmem [resolvable:$true] %s1724_s9 }
0x1a17   :  { %s2186_s18 = scalar_lea.vmem %s1725_s9, 32  ;;  %p2191_p9 = scmp.lt.s32.totalorder %s1725_s9, %s1725_s9 }
0x1a18   :  { %p2187_p8 = scmp.ne.s32.totalorder %s1725_s9, %s2186_s18  ;;  %p2192_p10 = scmp.lt.s32.totalorder %s2186_s18, %s2186_s18 }
0x1a1a   :  { %p2193_p11 = por %p2192_p10, %p2191_p9 }
0x1a1c   :  { %p2194_p12 = pnand %p2193_p11, %p2187_p8 }
0x1ad2   :  { %v1712_v19 = vpop.f32.mrb[12].mxu1 }
0x1ad3   :  { %v1713_v63 = vadd.f32 %v1791_v22, %v1712_v19  ;;  %v1965_v14 = vpop.f32.mrb[13].mxu1 }
0x1ad5   :  { %1717 = vst.msk [vmem:[#allocation3] sm:$0x3] %vm1716_vm8, %v1713_v63 }
0x1ad6   :  { %2197 = shalt.err (!%p2194_p12)
}
0x1ad7   :  { %s2198_s19 = scalar_lea.hbm %s2600_s12, 32 }
0x1ad8   :  { %p2199_p13 = scmp.ne.s32.totalorder %s2600_s12, %s2198_s19  ;;  %p2202_p0 = scmp.lt.u32.totalorder %s2198_s19, %s2600_s12 }
0x1ada   :  { %p2204_p1 = pnand %p2202_p0, %p2199_p13 }
0x1adc   :  { %2207 = shalt.err (!%p2204_p1)
}
0x1add   :  { %1727 = dma.vmem_to_hbm [thread:$0]  %s1725_s9, 32, %s2600_s12, [#allocation4]  }
0x1ade   :  { %2208 = dma.done.wait [#allocation4], 32  }
0x1adf   :  { %2209 = vsyncadd [#allocation4], 4294967264 }
0x1ae0   :  { %2210 = dma.done.wait [#allocation6], 256  }
0x1ae1   :  { %2211 = vsyncadd [#allocation6], 4294967040 }
0x1ae2   :  { %1750 = vsyncpa [#allocation4], 1 }
0x1ae3   :  { %1751 = vsyncpa [#allocation6], 1 }

</bundles_post_ra>
